<compile_context>
chip_gen: v5e
topology: v5e:2x2
jax: 0.10.0
libtpu: 0.0.40
codegen_flags: <defaults>
</compile_context>

<pallas_src>
import functools

import jax
import jax.numpy as jnp
from jax.experimental import pallas as pl
from jax.experimental.pallas import tpu as pltpu

K = 3        # kernel size (3x3, stride 1, padding 1)
LANE = 128   # TPU lane width


def _round_up(x, m):
    return ((x + m - 1) // m) * m


def _pick_row_tile(m, target=128):
    """Divisor of m that is a multiple of 8 and closest to `target` (else m)."""
    best = m
    for t in range(8, m + 1, 8):
        if m % t == 0 and abs(t - target) < abs(best - target):
            best = t
    return best


def _conv_bn_relu_kernel(x_ref, w_ref, scale_ref, bias_ref, o_ref, *, wp2, tm):
    # x_ref:     (1, P_in, Cin)      f32  zero-padded image, flattened (H+2)*(W+2) rows
    # w_ref:     (9, Cin, Cout_pad)  bf16 tap-major packed conv weights (lane-dense)
    # scale_ref: (1, Cout_pad)       f32  folded BN scale  = gamma / sqrt(var + eps)
    # bias_ref:  (1, Cout_pad)       f32  folded BN offset = (conv_b - mean)*scale + beta
    # o_ref:     (1, M, Cout_pad)    f32  flattened output rows, M = H*(W+2)
    m_total = o_ref.shape[1]
    cout_p = o_ref.shape[2]
    scale = scale_ref[...]
    bias = bias_ref[...]

    for c in range(m_total // tm):                 # static row-tile loop (bounds acc)
        row0 = c * tm
        acc = jnp.zeros((tm, cout_p), dtype=jnp.float32)
        for kh in range(K):
            for kw in range(K):
                d = kh * wp2 + kw                  # static flat-row offset of this tap
                lhs = x_ref[0, row0 + d: row0 + d + tm, :].astype(jnp.bfloat16)
                acc = acc + jnp.dot(lhs, w_ref[kh * K + kw],
                                    preferred_element_type=jnp.float32)
        y = jnp.maximum(acc * scale + bias, 0.0)   # fused BN (eval) + ReLU, f32
        o_ref[0, row0: row0 + tm, :] = y


def conv_block_forward(x_nchw, w_oihw, conv_b, gamma, beta, run_mean, run_var,
                       eps=1e-5):
    """Forward pass of ConvBlock. Input/output are NCHW float32."""
    N, Cin, H, W = x_nchw.shape
    Cout = w_oihw.shape[0]
    wp2 = W + 2
    M = H * wp2                                 # flattened output rows (W kept padded)
    P_img = (H + 2) * wp2
    P_in = _round_up(2 * wp2 + 2 + M, 8)        # deepest tap offset + M, 8-aligned
    cout_p = _round_up(Cout, LANE)
    tm = _pick_row_tile(M)

    # ---- layout glue + parameter folding (plain JAX; in a full network keep
    #      activations NHWC/flattened end-to-end instead of per-block transposes) ----
    x_nhwc = jnp.transpose(x_nchw, (0, 2, 3, 1))
    x_pad = jnp.pad(x_nhwc, ((0, 0), (1, 1), (1, 1), (0, 0)))
    x_flat = x_pad.reshape(N, P_img, Cin)
    x_flat = jnp.pad(x_flat, ((0, 0), (0, P_in - P_img), (0, 0))).astype(jnp.float32)

    w_taps = jnp.transpose(w_oihw, (2, 3, 1, 0)).reshape(K * K, Cin, Cout)  # (9,Cin,Cout)
    w_taps = jnp.pad(w_taps, ((0, 0), (0, 0), (0, cout_p - Cout))).astype(jnp.bfloat16)

    scale = gamma / jnp.sqrt(run_var + eps)                                 # (Cout,)
    bias = (conv_b - run_mean) * scale + beta                               # (Cout,)
    scale_p = jnp.pad(scale, (0, cout_p - Cout)).reshape(1, cout_p).astype(jnp.float32)
    bias_p = jnp.pad(bias, (0, cout_p - Cout)).reshape(1, cout_p).astype(jnp.float32)

    kernel = functools.partial(_conv_bn_relu_kernel, wp2=wp2, tm=tm)

    cost = pl.CostEstimate(
        flops=2 * N * H * W * Cout * K * K * Cin,
        transcendentals=0,
        bytes_accessed=(x_flat.size * 4 + w_taps.size * 2
                        + scale_p.size * 4 + bias_p.size * 4
                        + N * M * cout_p * 4))

    out_flat = pl.pallas_call(
        kernel,
        out_shape=jax.ShapeDtypeStruct((N, M, cout_p), jnp.float32),
        grid=(N,),
        in_specs=[
            pl.BlockSpec((1, P_in, Cin), lambda n: (n, 0, 0)),
            pl.BlockSpec((K * K, Cin, cout_p), lambda n: (0, 0, 0)),
            pl.BlockSpec((1, cout_p), lambda n: (0, 0)),
            pl.BlockSpec((1, cout_p), lambda n: (0, 0)),
        ],
        out_specs=pl.BlockSpec((1, M, cout_p), lambda n: (n, 0, 0)),
        compiler_params=pltpu.CompilerParams(
            dimension_semantics=("parallel",)),
        cost_estimate=cost,
    )(x_flat, w_taps, scale_p, bias_p)

    out = out_flat.reshape(N, H, wp2, cout_p)[:, :, :W, :Cout]   # drop pad cols/lanes
    return jnp.transpose(out, (0, 3, 1, 2))                      # back to NCHW


def _reference_forward(x_nchw, w_oihw, conv_b, gamma, beta, run_mean, run_var,
                       eps=1e-5):
    """Pure-JAX reference (NCHW conv + eval-mode BN + ReLU)."""
    y = jax.lax.conv_general_dilated(
        x_nchw, w_oihw, window_strides=(1, 1), padding=((1, 1), (1, 1)),
        dimension_numbers=("NCHW", "OIHW", "NCHW"))
    y = y + conv_b[None, :, None, None]
    y = (y - run_mean[None, :, None, None]) / jnp.sqrt(
        run_var[None, :, None, None] + eps)
    y = y * gamma[None, :, None, None] + beta[None, :, None, None]
    return jnp.maximum(y, 0.0)


if __name__ == "__main__":
    key = jax.random.PRNGKey(0)
    N, Cin, H, W = 2, 4, 16, 16
    Cout = 8

    k1, k2, k3 = jax.random.split(key, 3)
    x = jax.random.normal(k1, (N, Cin, H, W), dtype=jnp.float32)

    # Deterministic parameter init (Conv2d weight/bias; BN at PyTorch defaults).
    fan_in = Cin * K * K
    bound = 1.0 / (fan_in ** 0.5)
    conv_w = jax.random.uniform(k2, (Cout, Cin, K, K), jnp.float32,
                                minval=-bound, maxval=bound)
    conv_b = jax.random.uniform(k3, (Cout,), jnp.float32,
                                minval=-bound, maxval=bound)
    gamma = jnp.ones((Cout,), jnp.float32)
    beta = jnp.zeros((Cout,), jnp.float32)
    run_mean = jnp.zeros((Cout,), jnp.float32)
    run_var = jnp.ones((Cout,), jnp.float32)

    out = conv_block_forward(x, conv_w, conv_b, gamma, beta, run_mean, run_var)
    out = jax.block_until_ready(out)

    ref = _reference_forward(x, conv_w, conv_b, gamma, beta, run_mean, run_var)
    assert out.shape == (N, Cout, H, W)
    # bf16 matmul inputs -> loosened tolerance vs the f32 reference.
    assert jnp.allclose(out, ref, atol=3e-2, rtol=3e-2), "mismatch vs reference"

    print("KERNEL_OK")
</pallas_src>

<mosaic_0001>
module attributes {stable_mosaic.version = 11 : i64} {
  func.func @_conv_bn_relu_kernel(%arg0: i32, %arg1: memref<1x328x4xf32, #tpu.memory_space<vmem>>, %arg2: memref<9x4x128xbf16, #tpu.memory_space<vmem>>, %arg3: memref<1x128xf32, #tpu.memory_space<vmem>>, %arg4: memref<1x128xf32, #tpu.memory_space<vmem>>, %arg5: memref<1x288x128xf32, #tpu.memory_space<vmem>>) attributes {dimension_semantics = [#tpu.dimension_semantics<parallel>], iteration_bounds = array<i64: 2>, scalar_prefetch = 0 : i64, scratch_operands = 0 : i64, tpu.core_type = #tpu.core_type<tc>, window_params = [{transform_indices = @transform_0, window_bounds = array<i64: 1, 328, 4>}, {pipeline_mode = #tpu.pipeline_mode<synchronous>, transform_indices = @transform_1, window_bounds = array<i64: 9, 4, 128>}, {pipeline_mode = #tpu.pipeline_mode<synchronous>, transform_indices = @transform_2, window_bounds = array<i64: 1, 128>}, {pipeline_mode = #tpu.pipeline_mode<synchronous>, transform_indices = @transform_3, window_bounds = array<i64: 1, 128>}, {transform_indices = @transform_4, window_bounds = array<i64: 1, 288, 128>}]} {
    %c0 = arith.constant 0 : index
    %c0_0 = arith.constant 0 : index
    %0 = vector.load %arg3[%c0, %c0_0] : memref<1x128xf32, #tpu.memory_space<vmem>>, vector<1x128xf32>
    %c0_1 = arith.constant 0 : index
    %c0_2 = arith.constant 0 : index
    %1 = vector.load %arg4[%c0_1, %c0_2] : memref<1x128xf32, #tpu.memory_space<vmem>>, vector<1x128xf32>
    %cst = arith.constant 0.000000e+00 : f32
    %2 = vector.broadcast %cst : f32 to vector<144x128xf32>
    %c0_3 = arith.constant 0 : index
    %c0_4 = arith.constant 0 : index
    %c0_5 = arith.constant 0 : index
    %3 = vector.load %arg1[%c0_3, %c0_4, %c0_5] : memref<1x328x4xf32, #tpu.memory_space<vmem>>, vector<1x144x4xf32>
    %4 = vector.shape_cast %3 : vector<1x144x4xf32> to vector<144x4xf32>
    %5 = arith.truncf %4 : vector<144x4xf32> to vector<144x4xbf16>
    %c0_6 = arith.constant 0 : index
    %c0_7 = arith.constant 0 : index
    %c0_8 = arith.constant 0 : index
    %6 = vector.load %arg2[%c0_6, %c0_7, %c0_8] : memref<9x4x128xbf16, #tpu.memory_space<vmem>>, vector<1x4x128xbf16>
    %7 = vector.shape_cast %6 : vector<1x4x128xbf16> to vector<4x128xbf16>
    %cst_9 = arith.constant dense<0.000000e+00> : vector<144x128xf32>
    %8 = tpu.matmul %5, %7, %cst_9 {dimension_numbers = #tpu.dot_dimension_numbers<[1], [0], [0], [1], [0, 0, 1, 1], [], []>} : vector<144x4xbf16>, vector<4x128xbf16>, vector<144x128xf32> -> vector<144x128xf32>
    %9 = arith.addf %2, %8 : vector<144x128xf32>
    %c0_10 = arith.constant 0 : index
    %c1 = arith.constant 1 : index
    %c0_11 = arith.constant 0 : index
    %10 = vector.load %arg1[%c0_10, %c1, %c0_11] : memref<1x328x4xf32, #tpu.memory_space<vmem>>, vector<1x144x4xf32>
    %11 = vector.shape_cast %10 : vector<1x144x4xf32> to vector<144x4xf32>
    %12 = arith.truncf %11 : vector<144x4xf32> to vector<144x4xbf16>
    %c1_12 = arith.constant 1 : index
    %c0_13 = arith.constant 0 : index
    %c0_14 = arith.constant 0 : index
    %13 = vector.load %arg2[%c1_12, %c0_13, %c0_14] : memref<9x4x128xbf16, #tpu.memory_space<vmem>>, vector<1x4x128xbf16>
    %14 = vector.shape_cast %13 : vector<1x4x128xbf16> to vector<4x128xbf16>
    %cst_15 = arith.constant dense<0.000000e+00> : vector<144x128xf32>
    %15 = tpu.matmul %12, %14, %cst_15 {dimension_numbers = #tpu.dot_dimension_numbers<[1], [0], [0], [1], [0, 0, 1, 1], [], []>} : vector<144x4xbf16>, vector<4x128xbf16>, vector<144x128xf32> -> vector<144x128xf32>
    %16 = arith.addf %9, %15 : vector<144x128xf32>
    %c0_16 = arith.constant 0 : index
    %c2 = arith.constant 2 : index
    %c0_17 = arith.constant 0 : index
    %17 = vector.load %arg1[%c0_16, %c2, %c0_17] : memref<1x328x4xf32, #tpu.memory_space<vmem>>, vector<1x144x4xf32>
    %18 = vector.shape_cast %17 : vector<1x144x4xf32> to vector<144x4xf32>
    %19 = arith.truncf %18 : vector<144x4xf32> to vector<144x4xbf16>
    %c2_18 = arith.constant 2 : index
    %c0_19 = arith.constant 0 : index
    %c0_20 = arith.constant 0 : index
    %20 = vector.load %arg2[%c2_18, %c0_19, %c0_20] : memref<9x4x128xbf16, #tpu.memory_space<vmem>>, vector<1x4x128xbf16>
    %21 = vector.shape_cast %20 : vector<1x4x128xbf16> to vector<4x128xbf16>
    %cst_21 = arith.constant dense<0.000000e+00> : vector<144x128xf32>
    %22 = tpu.matmul %19, %21, %cst_21 {dimension_numbers = #tpu.dot_dimension_numbers<[1], [0], [0], [1], [0, 0, 1, 1], [], []>} : vector<144x4xbf16>, vector<4x128xbf16>, vector<144x128xf32> -> vector<144x128xf32>
    %23 = arith.addf %16, %22 : vector<144x128xf32>
    %c0_22 = arith.constant 0 : index
    %c18 = arith.constant 18 : index
    %c0_23 = arith.constant 0 : index
    %24 = vector.load %arg1[%c0_22, %c18, %c0_23] : memref<1x328x4xf32, #tpu.memory_space<vmem>>, vector<1x144x4xf32>
    %25 = vector.shape_cast %24 : vector<1x144x4xf32> to vector<144x4xf32>
    %26 = arith.truncf %25 : vector<144x4xf32> to vector<144x4xbf16>
    %c3 = arith.constant 3 : index
    %c0_24 = arith.constant 0 : index
    %c0_25 = arith.constant 0 : index
    %27 = vector.load %arg2[%c3, %c0_24, %c0_25] : memref<9x4x128xbf16, #tpu.memory_space<vmem>>, vector<1x4x128xbf16>
    %28 = vector.shape_cast %27 : vector<1x4x128xbf16> to vector<4x128xbf16>
    %cst_26 = arith.constant dense<0.000000e+00> : vector<144x128xf32>
    %29 = tpu.matmul %26, %28, %cst_26 {dimension_numbers = #tpu.dot_dimension_numbers<[1], [0], [0], [1], [0, 0, 1, 1], [], []>} : vector<144x4xbf16>, vector<4x128xbf16>, vector<144x128xf32> -> vector<144x128xf32>
    %30 = arith.addf %23, %29 : vector<144x128xf32>
    %c0_27 = arith.constant 0 : index
    %c19 = arith.constant 19 : index
    %c0_28 = arith.constant 0 : index
    %31 = vector.load %arg1[%c0_27, %c19, %c0_28] : memref<1x328x4xf32, #tpu.memory_space<vmem>>, vector<1x144x4xf32>
    %32 = vector.shape_cast %31 : vector<1x144x4xf32> to vector<144x4xf32>
    %33 = arith.truncf %32 : vector<144x4xf32> to vector<144x4xbf16>
    %c4 = arith.constant 4 : index
    %c0_29 = arith.constant 0 : index
    %c0_30 = arith.constant 0 : index
    %34 = vector.load %arg2[%c4, %c0_29, %c0_30] : memref<9x4x128xbf16, #tpu.memory_space<vmem>>, vector<1x4x128xbf16>
    %35 = vector.shape_cast %34 : vector<1x4x128xbf16> to vector<4x128xbf16>
    %cst_31 = arith.constant dense<0.000000e+00> : vector<144x128xf32>
    %36 = tpu.matmul %33, %35, %cst_31 {dimension_numbers = #tpu.dot_dimension_numbers<[1], [0], [0], [1], [0, 0, 1, 1], [], []>} : vector<144x4xbf16>, vector<4x128xbf16>, vector<144x128xf32> -> vector<144x128xf32>
    %37 = arith.addf %30, %36 : vector<144x128xf32>
    %c0_32 = arith.constant 0 : index
    %c20 = arith.constant 20 : index
    %c0_33 = arith.constant 0 : index
    %38 = vector.load %arg1[%c0_32, %c20, %c0_33] : memref<1x328x4xf32, #tpu.memory_space<vmem>>, vector<1x144x4xf32>
    %39 = vector.shape_cast %38 : vector<1x144x4xf32> to vector<144x4xf32>
    %40 = arith.truncf %39 : vector<144x4xf32> to vector<144x4xbf16>
    %c5 = arith.constant 5 : index
    %c0_34 = arith.constant 0 : index
    %c0_35 = arith.constant 0 : index
    %41 = vector.load %arg2[%c5, %c0_34, %c0_35] : memref<9x4x128xbf16, #tpu.memory_space<vmem>>, vector<1x4x128xbf16>
    %42 = vector.shape_cast %41 : vector<1x4x128xbf16> to vector<4x128xbf16>
    %cst_36 = arith.constant dense<0.000000e+00> : vector<144x128xf32>
    %43 = tpu.matmul %40, %42, %cst_36 {dimension_numbers = #tpu.dot_dimension_numbers<[1], [0], [0], [1], [0, 0, 1, 1], [], []>} : vector<144x4xbf16>, vector<4x128xbf16>, vector<144x128xf32> -> vector<144x128xf32>
    %44 = arith.addf %37, %43 : vector<144x128xf32>
    %c0_37 = arith.constant 0 : index
    %c36 = arith.constant 36 : index
    %c0_38 = arith.constant 0 : index
    %45 = vector.load %arg1[%c0_37, %c36, %c0_38] : memref<1x328x4xf32, #tpu.memory_space<vmem>>, vector<1x144x4xf32>
    %46 = vector.shape_cast %45 : vector<1x144x4xf32> to vector<144x4xf32>
    %47 = arith.truncf %46 : vector<144x4xf32> to vector<144x4xbf16>
    %c6 = arith.constant 6 : index
    %c0_39 = arith.constant 0 : index
    %c0_40 = arith.constant 0 : index
    %48 = vector.load %arg2[%c6, %c0_39, %c0_40] : memref<9x4x128xbf16, #tpu.memory_space<vmem>>, vector<1x4x128xbf16>
    %49 = vector.shape_cast %48 : vector<1x4x128xbf16> to vector<4x128xbf16>
    %cst_41 = arith.constant dense<0.000000e+00> : vector<144x128xf32>
    %50 = tpu.matmul %47, %49, %cst_41 {dimension_numbers = #tpu.dot_dimension_numbers<[1], [0], [0], [1], [0, 0, 1, 1], [], []>} : vector<144x4xbf16>, vector<4x128xbf16>, vector<144x128xf32> -> vector<144x128xf32>
    %51 = arith.addf %44, %50 : vector<144x128xf32>
    %c0_42 = arith.constant 0 : index
    %c37 = arith.constant 37 : index
    %c0_43 = arith.constant 0 : index
    %52 = vector.load %arg1[%c0_42, %c37, %c0_43] : memref<1x328x4xf32, #tpu.memory_space<vmem>>, vector<1x144x4xf32>
    %53 = vector.shape_cast %52 : vector<1x144x4xf32> to vector<144x4xf32>
    %54 = arith.truncf %53 : vector<144x4xf32> to vector<144x4xbf16>
    %c7 = arith.constant 7 : index
    %c0_44 = arith.constant 0 : index
    %c0_45 = arith.constant 0 : index
    %55 = vector.load %arg2[%c7, %c0_44, %c0_45] : memref<9x4x128xbf16, #tpu.memory_space<vmem>>, vector<1x4x128xbf16>
    %56 = vector.shape_cast %55 : vector<1x4x128xbf16> to vector<4x128xbf16>
    %cst_46 = arith.constant dense<0.000000e+00> : vector<144x128xf32>
    %57 = tpu.matmul %54, %56, %cst_46 {dimension_numbers = #tpu.dot_dimension_numbers<[1], [0], [0], [1], [0, 0, 1, 1], [], []>} : vector<144x4xbf16>, vector<4x128xbf16>, vector<144x128xf32> -> vector<144x128xf32>
    %58 = arith.addf %51, %57 : vector<144x128xf32>
    %c0_47 = arith.constant 0 : index
    %c38 = arith.constant 38 : index
    %c0_48 = arith.constant 0 : index
    %59 = vector.load %arg1[%c0_47, %c38, %c0_48] : memref<1x328x4xf32, #tpu.memory_space<vmem>>, vector<1x144x4xf32>
    %60 = vector.shape_cast %59 : vector<1x144x4xf32> to vector<144x4xf32>
    %61 = arith.truncf %60 : vector<144x4xf32> to vector<144x4xbf16>
    %c8 = arith.constant 8 : index
    %c0_49 = arith.constant 0 : index
    %c0_50 = arith.constant 0 : index
    %62 = vector.load %arg2[%c8, %c0_49, %c0_50] : memref<9x4x128xbf16, #tpu.memory_space<vmem>>, vector<1x4x128xbf16>
    %63 = vector.shape_cast %62 : vector<1x4x128xbf16> to vector<4x128xbf16>
    %cst_51 = arith.constant dense<0.000000e+00> : vector<144x128xf32>
    %64 = tpu.matmul %61, %63, %cst_51 {dimension_numbers = #tpu.dot_dimension_numbers<[1], [0], [0], [1], [0, 0, 1, 1], [], []>} : vector<144x4xbf16>, vector<4x128xbf16>, vector<144x128xf32> -> vector<144x128xf32>
    %65 = arith.addf %58, %64 : vector<144x128xf32>
    %66 = vector.broadcast %0 : vector<1x128xf32> to vector<144x128xf32>
    %67 = arith.mulf %65, %66 : vector<144x128xf32>
    %68 = vector.broadcast %1 : vector<1x128xf32> to vector<144x128xf32>
    %69 = arith.addf %67, %68 : vector<144x128xf32>
    %cst_52 = arith.constant 0.000000e+00 : f32
    %70 = vector.broadcast %cst_52 : f32 to vector<144x128xf32>
    %71 = arith.maximumf %69, %70 : vector<144x128xf32>
    %c0_53 = arith.constant 0 : index
    %c0_54 = arith.constant 0 : index
    %c0_55 = arith.constant 0 : index
    %72 = vector.load %arg5[%c0_53, %c0_54, %c0_55] : memref<1x288x128xf32, #tpu.memory_space<vmem>>, vector<1x144x128xf32>
    %73 = vector.shape_cast %72 : vector<1x144x128xf32> to vector<144x128xf32>
    %74 = vector.shape_cast %71 : vector<144x128xf32> to vector<1x144x128xf32>
    tpu.vector_store %arg5[%c0_53, %c0_54, %c0_55], %74 {strides = array<i32>} : memref<1x288x128xf32, #tpu.memory_space<vmem>>, vector<1x144x128xf32>,
    %cst_56 = arith.constant 0.000000e+00 : f32
    %75 = vector.broadcast %cst_56 : f32 to vector<144x128xf32>
    %c0_57 = arith.constant 0 : index
    %c144 = arith.constant 144 : index
    %c0_58 = arith.constant 0 : index
    %76 = vector.load %arg1[%c0_57, %c144, %c0_58] : memref<1x328x4xf32, #tpu.memory_space<vmem>>, vector<1x144x4xf32>
    %77 = vector.shape_cast %76 : vector<1x144x4xf32> to vector<144x4xf32>
    %78 = arith.truncf %77 : vector<144x4xf32> to vector<144x4xbf16>
    %c0_59 = arith.constant 0 : index
    %c0_60 = arith.constant 0 : index
    %c0_61 = arith.constant 0 : index
    %79 = vector.load %arg2[%c0_59, %c0_60, %c0_61] : memref<9x4x128xbf16, #tpu.memory_space<vmem>>, vector<1x4x128xbf16>
    %80 = vector.shape_cast %79 : vector<1x4x128xbf16> to vector<4x128xbf16>
    %cst_62 = arith.constant dense<0.000000e+00> : vector<144x128xf32>
    %81 = tpu.matmul %78, %80, %cst_62 {dimension_numbers = #tpu.dot_dimension_numbers<[1], [0], [0], [1], [0, 0, 1, 1], [], []>} : vector<144x4xbf16>, vector<4x128xbf16>, vector<144x128xf32> -> vector<144x128xf32>
    %82 = arith.addf %75, %81 : vector<144x128xf32>
    %c0_63 = arith.constant 0 : index
    %c145 = arith.constant 145 : index
    %c0_64 = arith.constant 0 : index
    %83 = vector.load %arg1[%c0_63, %c145, %c0_64] : memref<1x328x4xf32, #tpu.memory_space<vmem>>, vector<1x144x4xf32>
    %84 = vector.shape_cast %83 : vector<1x144x4xf32> to vector<144x4xf32>
    %85 = arith.truncf %84 : vector<144x4xf32> to vector<144x4xbf16>
    %c1_65 = arith.constant 1 : index
    %c0_66 = arith.constant 0 : index
    %c0_67 = arith.constant 0 : index
    %86 = vector.load %arg2[%c1_65, %c0_66, %c0_67] : memref<9x4x128xbf16, #tpu.memory_space<vmem>>, vector<1x4x128xbf16>
    %87 = vector.shape_cast %86 : vector<1x4x128xbf16> to vector<4x128xbf16>
    %cst_68 = arith.constant dense<0.000000e+00> : vector<144x128xf32>
    %88 = tpu.matmul %85, %87, %cst_68 {dimension_numbers = #tpu.dot_dimension_numbers<[1], [0], [0], [1], [0, 0, 1, 1], [], []>} : vector<144x4xbf16>, vector<4x128xbf16>, vector<144x128xf32> -> vector<144x128xf32>
    %89 = arith.addf %82, %88 : vector<144x128xf32>
    %c0_69 = arith.constant 0 : index
    %c146 = arith.constant 146 : index
    %c0_70 = arith.constant 0 : index
    %90 = vector.load %arg1[%c0_69, %c146, %c0_70] : memref<1x328x4xf32, #tpu.memory_space<vmem>>, vector<1x144x4xf32>
    %91 = vector.shape_cast %90 : vector<1x144x4xf32> to vector<144x4xf32>
    %92 = arith.truncf %91 : vector<144x4xf32> to vector<144x4xbf16>
    %c2_71 = arith.constant 2 : index
    %c0_72 = arith.constant 0 : index
    %c0_73 = arith.constant 0 : index
    %93 = vector.load %arg2[%c2_71, %c0_72, %c0_73] : memref<9x4x128xbf16, #tpu.memory_space<vmem>>, vector<1x4x128xbf16>
    %94 = vector.shape_cast %93 : vector<1x4x128xbf16> to vector<4x128xbf16>
    %cst_74 = arith.constant dense<0.000000e+00> : vector<144x128xf32>
    %95 = tpu.matmul %92, %94, %cst_74 {dimension_numbers = #tpu.dot_dimension_numbers<[1], [0], [0], [1], [0, 0, 1, 1], [], []>} : vector<144x4xbf16>, vector<4x128xbf16>, vector<144x128xf32> -> vector<144x128xf32>
    %96 = arith.addf %89, %95 : vector<144x128xf32>
    %c0_75 = arith.constant 0 : index
    %c162 = arith.constant 162 : index
    %c0_76 = arith.constant 0 : index
    %97 = vector.load %arg1[%c0_75, %c162, %c0_76] : memref<1x328x4xf32, #tpu.memory_space<vmem>>, vector<1x144x4xf32>
    %98 = vector.shape_cast %97 : vector<1x144x4xf32> to vector<144x4xf32>
    %99 = arith.truncf %98 : vector<144x4xf32> to vector<144x4xbf16>
    %c3_77 = arith.constant 3 : index
    %c0_78 = arith.constant 0 : index
    %c0_79 = arith.constant 0 : index
    %100 = vector.load %arg2[%c3_77, %c0_78, %c0_79] : memref<9x4x128xbf16, #tpu.memory_space<vmem>>, vector<1x4x128xbf16>
    %101 = vector.shape_cast %100 : vector<1x4x128xbf16> to vector<4x128xbf16>
    %cst_80 = arith.constant dense<0.000000e+00> : vector<144x128xf32>
    %102 = tpu.matmul %99, %101, %cst_80 {dimension_numbers = #tpu.dot_dimension_numbers<[1], [0], [0], [1], [0, 0, 1, 1], [], []>} : vector<144x4xbf16>, vector<4x128xbf16>, vector<144x128xf32> -> vector<144x128xf32>
    %103 = arith.addf %96, %102 : vector<144x128xf32>
    %c0_81 = arith.constant 0 : index
    %c163 = arith.constant 163 : index
    %c0_82 = arith.constant 0 : index
    %104 = vector.load %arg1[%c0_81, %c163, %c0_82] : memref<1x328x4xf32, #tpu.memory_space<vmem>>, vector<1x144x4xf32>
    %105 = vector.shape_cast %104 : vector<1x144x4xf32> to vector<144x4xf32>
    %106 = arith.truncf %105 : vector<144x4xf32> to vector<144x4xbf16>
    %c4_83 = arith.constant 4 : index
    %c0_84 = arith.constant 0 : index
    %c0_85 = arith.constant 0 : index
    %107 = vector.load %arg2[%c4_83, %c0_84, %c0_85] : memref<9x4x128xbf16, #tpu.memory_space<vmem>>, vector<1x4x128xbf16>
    %108 = vector.shape_cast %107 : vector<1x4x128xbf16> to vector<4x128xbf16>
    %cst_86 = arith.constant dense<0.000000e+00> : vector<144x128xf32>
    %109 = tpu.matmul %106, %108, %cst_86 {dimension_numbers = #tpu.dot_dimension_numbers<[1], [0], [0], [1], [0, 0, 1, 1], [], []>} : vector<144x4xbf16>, vector<4x128xbf16>, vector<144x128xf32> -> vector<144x128xf32>
    %110 = arith.addf %103, %109 : vector<144x128xf32>
    %c0_87 = arith.constant 0 : index
    %c164 = arith.constant 164 : index
    %c0_88 = arith.constant 0 : index
    %111 = vector.load %arg1[%c0_87, %c164, %c0_88] : memref<1x328x4xf32, #tpu.memory_space<vmem>>, vector<1x144x4xf32>
    %112 = vector.shape_cast %111 : vector<1x144x4xf32> to vector<144x4xf32>
    %113 = arith.truncf %112 : vector<144x4xf32> to vector<144x4xbf16>
    %c5_89 = arith.constant 5 : index
    %c0_90 = arith.constant 0 : index
    %c0_91 = arith.constant 0 : index
    %114 = vector.load %arg2[%c5_89, %c0_90, %c0_91] : memref<9x4x128xbf16, #tpu.memory_space<vmem>>, vector<1x4x128xbf16>
    %115 = vector.shape_cast %114 : vector<1x4x128xbf16> to vector<4x128xbf16>
    %cst_92 = arith.constant dense<0.000000e+00> : vector<144x128xf32>
    %116 = tpu.matmul %113, %115, %cst_92 {dimension_numbers = #tpu.dot_dimension_numbers<[1], [0], [0], [1], [0, 0, 1, 1], [], []>} : vector<144x4xbf16>, vector<4x128xbf16>, vector<144x128xf32> -> vector<144x128xf32>
    %117 = arith.addf %110, %116 : vector<144x128xf32>
    %c0_93 = arith.constant 0 : index
    %c180 = arith.constant 180 : index
    %c0_94 = arith.constant 0 : index
    %118 = vector.load %arg1[%c0_93, %c180, %c0_94] : memref<1x328x4xf32, #tpu.memory_space<vmem>>, vector<1x144x4xf32>
    %119 = vector.shape_cast %118 : vector<1x144x4xf32> to vector<144x4xf32>
    %120 = arith.truncf %119 : vector<144x4xf32> to vector<144x4xbf16>
    %c6_95 = arith.constant 6 : index
    %c0_96 = arith.constant 0 : index
    %c0_97 = arith.constant 0 : index
    %121 = vector.load %arg2[%c6_95, %c0_96, %c0_97] : memref<9x4x128xbf16, #tpu.memory_space<vmem>>, vector<1x4x128xbf16>
    %122 = vector.shape_cast %121 : vector<1x4x128xbf16> to vector<4x128xbf16>
    %cst_98 = arith.constant dense<0.000000e+00> : vector<144x128xf32>
    %123 = tpu.matmul %120, %122, %cst_98 {dimension_numbers = #tpu.dot_dimension_numbers<[1], [0], [0], [1], [0, 0, 1, 1], [], []>} : vector<144x4xbf16>, vector<4x128xbf16>, vector<144x128xf32> -> vector<144x128xf32>
    %124 = arith.addf %117, %123 : vector<144x128xf32>
    %c0_99 = arith.constant 0 : index
    %c181 = arith.constant 181 : index
    %c0_100 = arith.constant 0 : index
    %125 = vector.load %arg1[%c0_99, %c181, %c0_100] : memref<1x328x4xf32, #tpu.memory_space<vmem>>, vector<1x144x4xf32>
    %126 = vector.shape_cast %125 : vector<1x144x4xf32> to vector<144x4xf32>
    %127 = arith.truncf %126 : vector<144x4xf32> to vector<144x4xbf16>
    %c7_101 = arith.constant 7 : index
    %c0_102 = arith.constant 0 : index
    %c0_103 = arith.constant 0 : index
    %128 = vector.load %arg2[%c7_101, %c0_102, %c0_103] : memref<9x4x128xbf16, #tpu.memory_space<vmem>>, vector<1x4x128xbf16>
    %129 = vector.shape_cast %128 : vector<1x4x128xbf16> to vector<4x128xbf16>
    %cst_104 = arith.constant dense<0.000000e+00> : vector<144x128xf32>
    %130 = tpu.matmul %127, %129, %cst_104 {dimension_numbers = #tpu.dot_dimension_numbers<[1], [0], [0], [1], [0, 0, 1, 1], [], []>} : vector<144x4xbf16>, vector<4x128xbf16>, vector<144x128xf32> -> vector<144x128xf32>
    %131 = arith.addf %124, %130 : vector<144x128xf32>
    %c0_105 = arith.constant 0 : index
    %c182 = arith.constant 182 : index
    %c0_106 = arith.constant 0 : index
    %132 = vector.load %arg1[%c0_105, %c182, %c0_106] : memref<1x328x4xf32, #tpu.memory_space<vmem>>, vector<1x144x4xf32>
    %133 = vector.shape_cast %132 : vector<1x144x4xf32> to vector<144x4xf32>
    %134 = arith.truncf %133 : vector<144x4xf32> to vector<144x4xbf16>
    %c8_107 = arith.constant 8 : index
    %c0_108 = arith.constant 0 : index
    %c0_109 = arith.constant 0 : index
    %135 = vector.load %arg2[%c8_107, %c0_108, %c0_109] : memref<9x4x128xbf16, #tpu.memory_space<vmem>>, vector<1x4x128xbf16>
    %136 = vector.shape_cast %135 : vector<1x4x128xbf16> to vector<4x128xbf16>
    %cst_110 = arith.constant dense<0.000000e+00> : vector<144x128xf32>
    %137 = tpu.matmul %134, %136, %cst_110 {dimension_numbers = #tpu.dot_dimension_numbers<[1], [0], [0], [1], [0, 0, 1, 1], [], []>} : vector<144x4xbf16>, vector<4x128xbf16>, vector<144x128xf32> -> vector<144x128xf32>
    %138 = arith.addf %131, %137 : vector<144x128xf32>
    %139 = vector.broadcast %0 : vector<1x128xf32> to vector<144x128xf32>
    %140 = arith.mulf %138, %139 : vector<144x128xf32>
    %141 = vector.broadcast %1 : vector<1x128xf32> to vector<144x128xf32>
    %142 = arith.addf %140, %141 : vector<144x128xf32>
    %cst_111 = arith.constant 0.000000e+00 : f32
    %143 = vector.broadcast %cst_111 : f32 to vector<144x128xf32>
    %144 = arith.maximumf %142, %143 : vector<144x128xf32>
    %c0_112 = arith.constant 0 : index
    %c144_113 = arith.constant 144 : index
    %c0_114 = arith.constant 0 : index
    %145 = vector.load %arg5[%c0_112, %c144_113, %c0_114] : memref<1x288x128xf32, #tpu.memory_space<vmem>>, vector<1x144x128xf32>
    %146 = vector.shape_cast %145 : vector<1x144x128xf32> to vector<144x128xf32>
    %147 = vector.shape_cast %144 : vector<144x128xf32> to vector<1x144x128xf32>
    tpu.vector_store %arg5[%c0_112, %c144_113, %c0_114], %147 {strides = array<i32>} : memref<1x288x128xf32, #tpu.memory_space<vmem>>, vector<1x144x128xf32>,
    return
  }
  func.func @transform_0(%arg0: i32) -> (i32, i32, i32) {
    %c0_i32 = arith.constant 0 : i32
    %c0_i32_0 = arith.constant 0 : i32
    %c0_i32_1 = arith.constant 0 : i32
    return %arg0, %c0_i32, %c0_i32_0 : i32, i32, i32
  }
  func.func @transform_1(%arg0: i32) -> (i32, i32, i32) {
    %c0_i32 = arith.constant 0 : i32
    %c0_i32_0 = arith.constant 0 : i32
    %c0_i32_1 = arith.constant 0 : i32
    %c0_i32_2 = arith.constant 0 : i32
    return %c0_i32, %c0_i32_0, %c0_i32_1 : i32, i32, i32
  }
  func.func @transform_2(%arg0: i32) -> (i32, i32) {
    %c0_i32 = arith.constant 0 : i32
    %c0_i32_0 = arith.constant 0 : i32
    %c0_i32_1 = arith.constant 0 : i32
    return %c0_i32, %c0_i32_0 : i32, i32
  }
  func.func @transform_3(%arg0: i32) -> (i32, i32) {
    %c0_i32 = arith.constant 0 : i32
    %c0_i32_0 = arith.constant 0 : i32
    %c0_i32_1 = arith.constant 0 : i32
    return %c0_i32, %c0_i32_0 : i32, i32
  }
  func.func @transform_4(%arg0: i32) -> (i32, i32, i32) {
    %c0_i32 = arith.constant 0 : i32
    %c0_i32_0 = arith.constant 0 : i32
    %c0_i32_1 = arith.constant 0 : i32
    return %arg0, %c0_i32, %c0_i32_0 : i32, i32, i32
  }
}

</mosaic_0001>

<bundles_post_ra>
// kernel: tpu_custom_call.1
= control target key start
LH: loop header
LB: loop body
LE: loop exit
PB: predicated region body
PF: predicated region fallthrough
CT: control target
= control target key end

     0   :  { %9 = vsyncpa [#allocation3], 0  ;;  %s4000_s0 = inlined_call_operand.vmem [shape: f32[2,328,4], index: 0, kind: input, shape index: {}]   ;;  %s4001_s1 = inlined_call_operand.vmem [shape: bf16[9,4,128], index: 1, kind: input, shape index: {}]   ;;  %s4002_s2 = inlined_call_operand.vmem [shape: f32[1,128], index: 2, kind: input, shape index: {}]   ;;  %s4003_s3 = inlined_call_operand.vmem [shape: f32[1,128], index: 3, kind: input, shape index: {}]   ;;  %s4004_s4 = inlined_call_operand.hbm [shape: f32[2,288,128], index: 4, kind: output, shape index: {}]  }
   0x1   :  { %11 = vsyncpa [#allocation3 + $0x1], 0  ;;  %s3032_s15 = smov 0   ;;  %s3034_s16 = smov 0  }
   0x2   :  { %s3036_s17 = smov 0   ;;  %s3038_s18 = smov 0  }
   0x3 LB: > { %s3053_s19 = sadd.s32 4294967295, %s3003_s18   ;;  %s2705_s20 = sadd.s32 4294967294, %s3003_s18   ;;  %s3003_s18 = sphi %s3038_s18, %s4010_s18   ;;  %s2999_s17 = sphi %s3036_s17, %s4009_s17   ;;  %s2995_s16 = sphi %s3034_s16, %s4008_s16   ;;  %s2991_s15 = sphi %s3032_s15, %s4007_s15  }
   0x4   : > { %s3057_s21 = sadd.s32 1, %s3003_s18   ;;  %s113_s22 = sadd.s32 1, %s2999_s17 }
   0x5   : > { %s110_s23 = ssub.s32 %s3003_s18, %s3057_s21  ;;  %p123_p0 = scmp.ne.s32.totalorder %s2999_s17, %s2995_s16 }
   0x6   : > { %p111_p1 = scmp.eq.s32.totalorder %s110_s23, 0  ;;  %p124_p2 = scmp.eq.s32.totalorder %s3053_s19, 1 }
   0x7   : > { %p129_p3 = scmp.ne.s32.totalorder %s2995_s16, %s2991_s15  ;;  %p130_p4 = scmp.eq.s32.totalorder %s2705_s20, 1 }
   0x8   : > { %s3068_s24 = scalar_select %p111_p1, %s2999_s17, %s113_s22  }
   0x9   : > { %p3070_p5 = por %p124_p2, %p123_p0  ;;  %p3074_p6 = por %p130_p4, %p129_p3 }
   0xa   : > { %p2708_p7 = scmp.ge.s32.totalorder %s3003_s18, 1  ;;  %p165_p8 = scmp.lt.s32.totalorder %s3003_s18, 3 }
   0xc   : > { %p166_p9 = pnand %p2708_p7, %p165_p8 }
   0xd   : > { %p191_p10 = scmp.lt.s32.totalorder (!%p166_p9), %s3053_s19, 1  ;;  %s188_s9 = sand.u32 (!%p166_p9), 1, %s2995_s16  }
   0xe   : > { %169 = sbr.rel (%p166_p9) target bundleno = 816 (0x330), region = 36  ;;  %s2628_s8 = scalar_lea.sflag (!%p166_p9), [#allocation3], %s188_s9 }
   0xf   : > { %s2895_s29 = smul.u32 (!%p166_p9), 288, %s3053_s19 }
  0x11   : > { %s2639_s6 = scalar_lea.hbm (!%p166_p9), %s4004_s4, %s2895_s29 }
  0x13   : > { %v2710_v0 = vld [vmem:[%s4001_s1 + $0x2] sm:$0x3]  ;;  %vm284_vm0 = vcmask 1041408   ;;  %v226_v1 = vld [vmem:[%s4001_s1] sm:$0x3]  ;;  %s192_s7 = scalar_select %p191_p10, %s3053_s19, 1 }
  0x14   : > { %v286_v2 = vsel %vm284_vm0, %v2710_v0, 0  ;;  %v370_v3 = vsel %vm284_vm0, %v226_v1, 0  ;;  %v2749_v4 = vld [vmem:[%s4001_s1 + $0x8] sm:$0x3]  ;;  %v2759_v6 = vld [vmem:[%s4001_s1 + $0xa] sm:$0x3] }
  0x15   : > { %295 = vmatpush.bf16.msra.mxu0 %v286_v2  ;;  %2891 = vmatpush.bf16.msra.mxu2 %v286_v2  ;;  %v745_v5 = vsel %vm284_vm0, %v2749_v4, 0  ;;  %v2729_v7 = vld [vmem:[%s4001_s1 + $0x4] sm:$0x3]  ;;  %v876_v8 = vsel %vm284_vm0, %v2759_v6, 0  ;;  %v2739_v10 = vld [vmem:[%s4001_s1 + $0x6] sm:$0x3] }
  0x16   : > { %379 = vmatpush.bf16.msra.mxu1 %v370_v3  ;;  %2892 = vmatpush.bf16.msra.mxu3 %v370_v3  ;;  %v483_v9 = vsel %vm284_vm0, %v2729_v7, 0  ;;  %s2894_s14 = smul.u32 328, %s192_s7  ;;  %v614_v11 = vsel %vm284_vm0, %v2739_v10, 0  ;;  %vm256_vm1 = vcmask 31744   ;;  %v2769_v48 = vld [vmem:[%s4001_s1 + $0xc] sm:$0x3] }
  0x17   : > { %v2779_v49 = vld [vmem:[%s4001_s1 + $0xe] sm:$0x3]  ;;  %v1007_v50 = vsel %vm284_vm0, %v2769_v48, 0  ;;  %v2789_v0 = vld [vmem:[%s4001_s1 + $0x10] sm:$0x3]  ;;  %s2642_s19 = sshll.u32 %s2639_s6, 4  ;;  %s2643_s19 = int_to_ptr.hbm [resolvable:$true] %s2642_s19 }
  0x18   : > { %s3109_s23 = scalar_lea.vmem %s4000_s0, %s2894_s14  ;;  %v1138_v51 = vsel %vm284_vm0, %v2779_v49, 0  ;;  %v2799_v1 = vld [vmem:[%s4001_s1 + $0x2] sm:$0x3]  ;;  %v1269_v2 = vsel %vm284_vm0, %v2789_v0, 0  ;;  %s2893_s14 = smul.u32 288, %s188_s9 }
  0x19   : > { %754 = vmatpush.bf16.msrb.mxu0 %v745_v5  ;;  %492 = vmatpush.bf16.msrb.mxu2 %v483_v9  ;;  %v227_v12 = vld [vmem:[%s3109_s23 + $0x1] sm:$0xff]  ;;  %v228_v13 = vld [vmem:[%s3109_s23 + $0x9] sm:$0xff]  ;;  %v237_v14 = vld [vmem:[%s3109_s23 + $0x51] sm:$0xff]  ;;  %v1505_v3 = vsel %vm284_vm0, %v2799_v1, 0  ;;  %s2955_s10 = sshra.s32 %s2643_s19, 4  ;;  %s2956_s10 = int_to_ptr.hbm [resolvable:$true] %s2955_s10 }
  0x1a   : > { %885 = vmatpush.bf16.msrb.mxu1 %v876_v8  ;;  %623 = vmatpush.bf16.msrb.mxu3 %v614_v11  ;;  %v245_v15 = vpack.c.bf16 %v228_v13, %v227_v12  ;;  %v238_v16 = vld [vmem:[%s3109_s23 + $0x59] sm:$0xff]  ;;  %v200_v18 = vld [vmem:[%s3109_s23 + $0x8] sm:$0xff]  ;;  %v209_v21 = vld [vmem:[%s3109_s23 + $0x50] sm:$0xff]  ;;  %s3549_s20 = scalar_lea.vmem [#allocation2], %s2893_s14  ;;  %s2957_s11 = scalar_lea.hbm %s2956_s10, 288 }
  0x1b   : > { %v199_v17 = vld [vmem:[%s3109_s23] sm:$0xff]  ;;  %v250_v19 = vpack.c.bf16 %v238_v16, %v237_v14  ;;  %v210_v22 = vld [vmem:[%s3109_s23 + $0x58] sm:$0xff]  ;;  %v240_v27 = vld [vmem:[%s3109_s23 + $0x69] sm:$0xff]  ;;  %s2640_s7 = sshll.u32 %s3549_s20, 4  ;;  %p2958_p11 = scmp.ne.s32.totalorder %s2956_s10, %s2957_s11  ;;  %s2641_s7 = int_to_ptr.vmem [resolvable:$true] %s2640_s7 }
  0x1c   : > { %v217_v20 = vpack.c.bf16 %v200_v18, %v199_v17  ;;  %2711 = vmatmul.msk.bf16.vlgmr.msra.gmra.mxu0 %vm256_vm1, %v245_v15  ;;  %v222_v23 = vpack.c.bf16 %v210_v22, %v209_v21  ;;  %v229_v24 = vld [vmem:[%s3109_s23 + $0x11] sm:$0xff]  ;;  %v230_v25 = vld [vmem:[%s3109_s23 + $0x19] sm:$0xff]  ;;  %v239_v26 = vld [vmem:[%s3109_s23 + $0x61] sm:$0xff]  ;;  %s2961_s14 = scalar_lea.hbm %s4004_s4, 576  ;;  %p2962_p0 = scmp.lt.s32.totalorder %s2956_s10, %s4004_s4 }
  0x1d   : > { %2716 = vmatmul.msk.bf16.vlgmr.msra.gmra.mxu2 %vm256_vm1, %v250_v19  ;;  %v201_v28 = vld [vmem:[%s3109_s23 + $0x10] sm:$0xff]  ;;  %v202_v29 = vld [vmem:[%s3109_s23 + $0x18] sm:$0xff]  ;;  %v211_v30 = vld [vmem:[%s3109_s23 + $0x60] sm:$0xff]  ;;  %v246_v32 = vpack.c.bf16 %v230_v25, %v229_v24  ;;  %v251_v33 = vpack.c.bf16 %v240_v27, %v239_v26  ;;  %1278 = vmatpush.bf16.msra.mxu0 %v1269_v2  ;;  %p2959_p12 = pnand %p2958_p11, %p3070_p5  ;;  %p2963_p1 = scmp.lt.s32.totalorder %s2961_s14, %s2957_s11 }
  0x1e   : > { %2720 = vmatmul.msk.bf16.vlgmr.msra.gmra.mxu1 %vm256_vm1, %v217_v20  ;;  %2725 = vmatmul.msk.bf16.vlgmr.msra.gmra.mxu3 %vm256_vm1, %v222_v23  ;;  %v212_v31 = vld [vmem:[%s3109_s23 + $0x68] sm:$0xff]  ;;  %v218_v34 = vpack.c.bf16 %v202_v29, %v201_v28  ;;  %v241_v38 = vld [vmem:[%s3109_s23 + $0x71] sm:$0xff]  ;;  %v242_v39 = vld [vmem:[%s3109_s23 + $0x79] sm:$0xff] }
  0x1f   : > { %v223_v35 = vpack.c.bf16 %v212_v31, %v211_v30  ;;  %v231_v36 = vld [vmem:[%s3109_s23 + $0x21] sm:$0xff]  ;;  %v232_v37 = vld [vmem:[%s3109_s23 + $0x29] sm:$0xff]  ;;  %v214_v43 = vld [vmem:[%s3109_s23 + $0x78] sm:$0xff]  ;;  %v252_v45 = vpack.c.bf16 %v242_v39, %v241_v38  ;;  %1016 = vmatpush.bf16.msra.mxu2 %v1007_v50  ;;  %1147 = vmatpush.bf16.msra.mxu3 %v1138_v51  ;;  %p2960_p13 = pneg %p2959_p12  ;;  %p2964_p2 = por %p2963_p1, %p2962_p0 }
  0x20   : > { %v203_v40 = vld [vmem:[%s3109_s23 + $0x20] sm:$0xff]  ;;  %v204_v41 = vld [vmem:[%s3109_s23 + $0x28] sm:$0xff]  ;;  %v213_v42 = vld [vmem:[%s3109_s23 + $0x70] sm:$0xff]  ;;  %v247_v44 = vpack.c.bf16 %v232_v37, %v231_v36  ;;  %1514 = vmatpush.bf16.msra.mxu1 %v1505_v3 }
  0x21   : > { %v219_v46 = vpack.c.bf16 %v204_v41, %v203_v40  ;;  %v224_v47 = vpack.c.bf16 %v214_v43, %v213_v42  ;;  %v233_v52 = vld [vmem:[%s3109_s23 + $0x31] sm:$0xff]  ;;  %v234_v53 = vld [vmem:[%s3109_s23 + $0x39] sm:$0xff]  ;;  %v243_v54 = vld [vmem:[%s3109_s23 + $0x81] sm:$0xff]  ;;  %p2965_p3 = pnand %p2964_p2, %p2960_p13 }
  0x22   : > { %v244_v55 = vld [vmem:[%s3109_s23 + $0x89] sm:$0xff]  ;;  %v206_v57 = vld [vmem:[%s3109_s23 + $0x38] sm:$0xff]  ;;  %v215_v58 = vld [vmem:[%s3109_s23 + $0x80] sm:$0xff]  ;;  %v248_v60 = vpack.c.bf16 %v234_v53, %v233_v52 }
  0x23   : > { %v205_v56 = vld [vmem:[%s3109_s23 + $0x30] sm:$0xff]  ;;  %v216_v59 = vld [vmem:[%s3109_s23 + $0x88] sm:$0xff]  ;;  %v253_v61 = vpack.c.bf16 %v244_v55, %v243_v54  ;;  %v207_v6 = vld [vmem:[%s3109_s23 + $0x40] sm:$0xff] }
  0x24   : > { %v220_v62 = vpack.c.bf16 %v206_v57, %v205_v56  ;;  %v225_v63 = vpack.c.bf16 %v216_v59, %v215_v58  ;;  %v235_v4 = vld [vmem:[%s3109_s23 + $0x41] sm:$0xff]  ;;  %v236_v5 = vld [vmem:[%s3109_s23 + $0x49] sm:$0xff]  ;;  %v557_v10 = vld [vmem:[%s3109_s23 + $0x12] sm:$0xff] }
  0x25   : > { %v208_v7 = vld [vmem:[%s3109_s23 + $0x48] sm:$0xff]  ;;  %v558_v11 = vld [vmem:[%s3109_s23 + $0x1a] sm:$0xff]  ;;  %v249_v12 = vpack.c.bf16 %v236_v5, %v235_v4  ;;  %v561_v29 = vld [vmem:[%s3109_s23 + $0x32] sm:$0xff] }
  0x26   : > { %v426_v8 = vld [vmem:[%s3109_s23 + $0x2] sm:$0xff]  ;;  %v427_v9 = vld [vmem:[%s3109_s23 + $0xa] sm:$0xff]  ;;  %v221_v13 = vpack.c.bf16 %v208_v7, %v207_v6  ;;  %v575_v15 = vpack.c.bf16 %v558_v11, %v557_v10  ;;  %v688_v16 = vld [vmem:[%s3109_s23 + $0x13] sm:$0xff] }
  0x27   : > { %v444_v14 = vpack.c.bf16 %v427_v9, %v426_v8  ;;  %v689_v17 = vld [vmem:[%s3109_s23 + $0x1b] sm:$0xff]  ;;  %v560_v21 = vld [vmem:[%s3109_s23 + $0x2a] sm:$0xff] }
  0x28   : > { %v819_v18 = vld [vmem:[%s3109_s23 + $0x14] sm:$0xff]  ;;  %v820_v19 = vld [vmem:[%s3109_s23 + $0x1c] sm:$0xff]  ;;  %v706_v22 = vpack.c.bf16 %v689_v17, %v688_v16  ;;  %v691_v26 = vld [vmem:[%s3109_s23 + $0x2b] sm:$0xff] }
  0x29   : > { %v559_v20 = vld [vmem:[%s3109_s23 + $0x22] sm:$0xff]  ;;  %v837_v23 = vpack.c.bf16 %v820_v19, %v819_v18  ;;  %v822_v28 = vld [vmem:[%s3109_s23 + $0x2c] sm:$0xff]  ;;  %v562_v30 = vld [vmem:[%s3109_s23 + $0x3a] sm:$0xff] }
  0x2a   : > { %v576_v24 = vpack.c.bf16 %v560_v21, %v559_v20  ;;  %v690_v25 = vld [vmem:[%s3109_s23 + $0x23] sm:$0xff]  ;;  %v823_v36 = vld [vmem:[%s3109_s23 + $0x34] sm:$0xff]  ;;  %v699_v19 = vld [vmem:[%s3109_s23 + $0x6b] sm:$0xff] }
  0x2b   : > { %v821_v27 = vld [vmem:[%s3109_s23 + $0x24] sm:$0xff]  ;;  %v707_v31 = vpack.c.bf16 %v691_v26, %v690_v25  ;;  %v824_v37 = vld [vmem:[%s3109_s23 + $0x3c] sm:$0xff]  ;;  %v830_v21 = vld [vmem:[%s3109_s23 + $0x6c] sm:$0xff] }
  0x2c   : > { %2712 = vmatmul.msk.bf16.gmra.mxu0 %vm256_vm1, %v246_v32  ;;  %v3203_v32 = vpack.c.bf16 %v822_v28, %v821_v27  ;;  %v563_v38 = vld [vmem:[%s3109_s23 + $0x42] sm:$0xff]  ;;  %v564_v39 = vld [vmem:[%s3109_s23 + $0x4a] sm:$0xff]  ;;  %v3216_v41 = vpack.c.bf16 %v824_v37, %v823_v36  ;;  %v566_v48 = vld [vmem:[%s3109_s23 + $0x5a] sm:$0xff] }
  0x2d   : > { %2717 = vmatmul.msk.bf16.gmra.mxu2 %vm256_vm1, %v251_v33  ;;  %v577_v33 = vpack.c.bf16 %v562_v30, %v561_v29  ;;  %v578_v42 = vpack.c.bf16 %v564_v39, %v563_v38  ;;  %v694_v43 = vld [vmem:[%s3109_s23 + $0x43] sm:$0xff] }
  0x2e   : > { %2721 = vmatmul.msk.bf16.gmra.mxu1 %vm256_vm1, %v218_v34  ;;  %2726 = vmatmul.msk.bf16.gmra.mxu3 %vm256_vm1, %v223_v35  ;;  %v692_v34 = vld [vmem:[%s3109_s23 + $0x33] sm:$0xff]  ;;  %v693_v35 = vld [vmem:[%s3109_s23 + $0x3b] sm:$0xff]  ;;  %v568_v2 = vld [vmem:[%s3109_s23 + $0x6a] sm:$0xff] }
  0x2f   : > { %v708_v40 = vpack.c.bf16 %v693_v35, %v692_v34  ;;  %v828_v0 = vld [vmem:[%s3109_s23 + $0x5c] sm:$0xff]  ;;  %v829_v20 = vld [vmem:[%s3109_s23 + $0x64] sm:$0xff] }
  0x30   : > { %v567_v1 = vld [vmem:[%s3109_s23 + $0x62] sm:$0xff]  ;;  %v3269_v28 = vpack.c.bf16 %v830_v21, %v829_v20 }
  0x31   : > { %v580_v10 = vpack.c.bf16 %v568_v2, %v567_v1  ;;  %v698_v18 = vld [vmem:[%s3109_s23 + $0x63] sm:$0xff]  ;;  %v1448_v2 = vld [vmem:[%s4001_s1] sm:$0x3] }
  0x32   : > { %v711_v25 = vpack.c.bf16 %v699_v19, %v698_v18 }
  0x3c   : > { %2713 = vmatmul.msk.bf16.gmra.mxu0 %vm256_vm1, %v247_v44  ;;  %v695_v44 = vld [vmem:[%s3109_s23 + $0x4b] sm:$0xff] }
  0x3d   : > { %2718 = vmatmul.msk.bf16.gmra.mxu2 %vm256_vm1, %v252_v45  ;;  %v825_v45 = vld [vmem:[%s3109_s23 + $0x44] sm:$0xff]  ;;  %v709_v49 = vpack.c.bf16 %v695_v44, %v694_v43  ;;  %v831_v43 = vld [vmem:[%s3109_s23 + $0x74] sm:$0xff]  ;;  %v832_v44 = vld [vmem:[%s3109_s23 + $0x7c] sm:$0xff] }
  0x3e   : > { %2722 = vmatmul.msk.bf16.gmra.mxu1 %vm256_vm1, %v219_v46  ;;  %2727 = vmatmul.msk.bf16.gmra.mxu3 %vm256_vm1, %v224_v47  ;;  %v826_v46 = vld [vmem:[%s3109_s23 + $0x4c] sm:$0xff] }
  0x3f   : > { %v565_v47 = vld [vmem:[%s3109_s23 + $0x52] sm:$0xff]  ;;  %v3229_v51 = vpack.c.bf16 %v826_v46, %v825_v45  ;;  %v571_v45 = vld [vmem:[%s3109_s23 + $0x82] sm:$0xff]  ;;  %v572_v46 = vld [vmem:[%s3109_s23 + $0x8a] sm:$0xff] }
  0x40   : > { %v579_v53 = vpack.c.bf16 %v566_v48, %v565_v47 }
  0x4c   : > { %2714 = vmatmul.msk.bf16.gmra.mxu0 %vm256_vm1, %v248_v60 }
  0x4d   : > { %2719 = vmatmul.msk.bf16.gmra.mxu2 %vm256_vm1, %v253_v61  ;;  %v696_v61 = vld [vmem:[%s3109_s23 + $0x53] sm:$0xff] }
  0x4e   : > { %2723 = vmatmul.msk.bf16.gmra.mxu1 %vm256_vm1, %v220_v62  ;;  %2728 = vmatmul.msk.bf16.gmra.mxu3 %vm256_vm1, %v225_v63  ;;  %v697_v62 = vld [vmem:[%s3109_s23 + $0x5b] sm:$0xff] }
  0x4f   : > { %v827_v63 = vld [vmem:[%s3109_s23 + $0x54] sm:$0xff]  ;;  %v710_v4 = vpack.c.bf16 %v697_v62, %v696_v61 }
  0x50   : > { %v3248_v7 = vpack.c.bf16 %v828_v0, %v827_v63 }
  0x5c   : > { %2715 = vmatmul.msk.bf16.gmra.mxu0 %vm256_vm1, %v249_v12 }
  0x5d   : > { %2730 = vmatmul.msk.bf16.vlgmr.msrb.gmra.mxu2 %vm256_vm1, %v444_v14 }
  0x5e   : > { %2724 = vmatmul.msk.bf16.gmra.mxu1 %vm256_vm1, %v221_v13  ;;  %2740 = vmatmul.msk.bf16.vlgmr.msrb.gmra.mxu3 %vm256_vm1, %v575_v15 }
  0x6c   : > { %2750 = vmatmul.msk.bf16.vlgmr.msrb.gmra.mxu0 %vm256_vm1, %v706_v22  ;;  %v569_v22 = vld [vmem:[%s3109_s23 + $0x72] sm:$0xff] }
  0x6d   : > { %2731 = vmatmul.msk.bf16.gmra.mxu2 %vm256_vm1, %v575_v15 }
  0x6e   : > { %2760 = vmatmul.msk.bf16.vlgmr.msrb.gmra.mxu1 %vm256_vm1, %v837_v23  ;;  %2741 = vmatmul.msk.bf16.gmra.mxu3 %vm256_vm1, %v576_v24  ;;  %v570_v23 = vld [vmem:[%s3109_s23 + $0x7a] sm:$0xff] }
  0x7c   : > { %2751 = vmatmul.msk.bf16.gmra.mxu0 %vm256_vm1, %v707_v31  ;;  %v581_v31 = vpack.c.bf16 %v570_v23, %v569_v22 }
  0x7d   : > { %2732 = vmatmul.msk.bf16.gmra.mxu2 %vm256_vm1, %v576_v24 }
  0x7e   : > { %2761 = vmatmul.msk.bf16.gmra.mxu1 %vm256_vm1, %v3203_v32  ;;  %2742 = vmatmul.msk.bf16.gmra.mxu3 %vm256_vm1, %v577_v33 }
  0x8c   : > { %2752 = vmatmul.msk.bf16.gmra.mxu0 %vm256_vm1, %v708_v40  ;;  %v700_v40 = vld [vmem:[%s3109_s23 + $0x73] sm:$0xff] }
  0x8d   : > { %2733 = vmatmul.msk.bf16.gmra.mxu2 %vm256_vm1, %v577_v33 }
  0x8e   : > { %2762 = vmatmul.msk.bf16.gmra.mxu1 %vm256_vm1, %v3216_v41  ;;  %2743 = vmatmul.msk.bf16.gmra.mxu3 %vm256_vm1, %v578_v42 }
  0x99   : > { %v297_v50 = vpop.f32.mrf.mxu0 }
  0x9b   : > { %v381_v52 = vpop.f32.mrf.mxu1 }
  0x9c   : > { %v3231_v54 = vadd.f32 %v381_v52, %v297_v50  ;;  %2753 = vmatmul.msk.bf16.gmra.mxu0 %vm256_vm1, %v709_v49  ;;  %v3290_v52 = vpack.c.bf16 %v832_v44, %v831_v43  ;;  %v704_v44 = vld [vmem:[%s3109_s23 + $0x93] sm:$0xff] }
  0x9d   : > { %2734 = vmatmul.msk.bf16.gmra.mxu2 %vm256_vm1, %v578_v42  ;;  %v701_v42 = vld [vmem:[%s3109_s23 + $0x7b] sm:$0xff] }
  0x9e   : > { %2763 = vmatmul.msk.bf16.gmra.mxu1 %vm256_vm1, %v3229_v51  ;;  %2744 = vmatmul.msk.bf16.gmra.mxu3 %vm256_vm1, %v579_v53  ;;  %v712_v48 = vpack.c.bf16 %v701_v42, %v700_v40 }
  0xa0   : > { %v322_v55 = vpop.f32.mrf.mxu2 }
  0xa1   : > { %v406_v56 = vpop.f32.mrf.mxu3  ;;  %v299_v57 = vpop.f32.mrf.mxu0 }
  0xa2   : > { %v3238_v58 = vadd.f32 %v406_v56, %v322_v55  ;;  %v582_v56 = vpack.c.bf16 %v572_v46, %v571_v45  ;;  %v705_v45 = vld [vmem:[%s3109_s23 + $0x9b] sm:$0xff] }
  0xa3   : > { %v383_v59 = vpop.f32.mrf.mxu1  ;;  %v835_v46 = vld [vmem:[%s3109_s23 + $0x94] sm:$0xff] }
  0xa4   : > { %v3240_v60 = vadd.f32 %v383_v59, %v299_v57 }
  0xa8   : > { %v324_v3 = vpop.f32.mrf.mxu2 }
  0xa9   : > { %v408_v5 = vpop.f32.mrf.mxu3  ;;  %v302_v6 = vpop.f32.mrf.mxu0 }
  0xaa   : > { %v3250_v8 = vadd.f32 %v408_v5, %v324_v3  ;;  %v2818_v3 = vld [vmem:[%s4001_s1 + $0x4] sm:$0x3]  ;;  %v703_v5 = vld [vmem:[%s3109_s23 + $0x8b] sm:$0xff] }
  0xab   : > { %v386_v9 = vpop.f32.mrf.mxu1 }
  0xac   : > { %v3252_v11 = vadd.f32 %v386_v9, %v302_v6  ;;  %2754 = vmatmul.msk.bf16.gmra.mxu0 %vm256_vm1, %v710_v4  ;;  %v702_v4 = vld [vmem:[%s3109_s23 + $0x83] sm:$0xff]  ;;  %v1589_v6 = vsel %vm284_vm0, %v1448_v2, 0  ;;  %v1701_v9 = vsel %vm284_vm0, %v2818_v3, 0 }
  0xad   : > { %2735 = vmatmul.msk.bf16.gmra.mxu2 %vm256_vm1, %v579_v53  ;;  %1710 = vmatpush.bf16.msrb.mxu3 %v1701_v9  ;;  %v713_v18 = vpack.c.bf16 %v703_v5, %v702_v4 }
  0xae   : > { %2764 = vmatmul.msk.bf16.gmra.mxu1 %vm256_vm1, %v3248_v7  ;;  %2745 = vmatmul.msk.bf16.gmra.mxu3 %vm256_vm1, %v580_v10 }
  0xaf   : > { %1598 = vmatpush.bf16.msrb.mxu2 %v1589_v6 }
  0xb0   : > { %v327_v12 = vpop.f32.mrf.mxu2 }
  0xb1   : > { %v411_v13 = vpop.f32.mrf.mxu3  ;;  %v304_v14 = vpop.f32.mrf.mxu0 }
  0xb2   : > { %v3259_v15 = vadd.f32 %v411_v13, %v327_v12  ;;  %v834_v12 = vld [vmem:[%s3109_s23 + $0x8c] sm:$0xff] }
  0xb3   : > { %v388_v16 = vpop.f32.mrf.mxu1  ;;  %v573_v13 = vld [vmem:[%s3109_s23 + $0x92] sm:$0xff] }
  0xb4   : > { %v3261_v17 = vadd.f32 %v388_v16, %v304_v14  ;;  %v574_v14 = vld [vmem:[%s3109_s23 + $0x9a] sm:$0xff] }
  0xb8   : > { %v329_v24 = vpop.f32.mrf.mxu2 }
  0xb9   : > { %v413_v26 = vpop.f32.mrf.mxu3  ;;  %v307_v27 = vpop.f32.mrf.mxu0 }
  0xba   : > { %v3271_v29 = vadd.f32 %v413_v26, %v329_v24  ;;  %v3323_v24 = vpack.c.bf16 %v574_v14, %v573_v13  ;;  %v2828_v26 = vld [vmem:[%s4001_s1 + $0x6] sm:$0x3] }
  0xbb   : > { %v391_v30 = vpop.f32.mrf.mxu1 }
  0xbc   : > { %v3273_v33 = vadd.f32 %v391_v30, %v307_v27  ;;  %2755 = vmatmul.msk.bf16.gmra.mxu0 %vm256_vm1, %v711_v25  ;;  %v2838_v27 = vld [vmem:[%s4001_s1 + $0x8] sm:$0x3]  ;;  %v1831_v30 = vsel %vm284_vm0, %v2828_v26, 0  ;;  %v1084_v26 = vld [vmem:[%s3109_s23 + $0x3d] sm:$0xff] }
  0xbd   : > { %2736 = vmatmul.msk.bf16.gmra.mxu2 %vm256_vm1, %v580_v10  ;;  %v833_v10 = vld [vmem:[%s3109_s23 + $0x84] sm:$0xff]  ;;  %1840 = vmatpush.bf16.msrb.mxu0 %v1831_v30 }
  0xbe   : > { %2765 = vmatmul.msk.bf16.gmra.mxu1 %vm256_vm1, %v3269_v28  ;;  %2746 = vmatmul.msk.bf16.gmra.mxu3 %vm256_vm1, %v581_v31  ;;  %v3319_v21 = vpack.c.bf16 %v834_v12, %v833_v10 }
  0xc0   : > { %v332_v34 = vpop.f32.mrf.mxu2 }
  0xc1   : > { %v416_v35 = vpop.f32.mrf.mxu3  ;;  %v309_v36 = vpop.f32.mrf.mxu0 }
  0xc2   : > { %v3280_v37 = vadd.f32 %v416_v35, %v332_v34 }
  0xc3   : > { %v393_v38 = vpop.f32.mrf.mxu1 }
  0xc4   : > { %v3282_v39 = vadd.f32 %v393_v38, %v309_v36 }
  0xc8   : > { %v334_v47 = vpop.f32.mrf.mxu2 }
  0xc9   : > { %v418_v49 = vpop.f32.mrf.mxu3  ;;  %v312_v50 = vpop.f32.mrf.mxu0 }
  0xca   : > { %v3292_v53 = vadd.f32 %v418_v49, %v334_v47  ;;  %v836_v47 = vld [vmem:[%s3109_s23 + $0x9c] sm:$0xff]  ;;  %v1082_v49 = vld [vmem:[%s3109_s23 + $0x2d] sm:$0xff] }
  0xcb   : > { %v396_v55 = vpop.f32.mrf.mxu1 }
  0xcc   : > { %v3294_v57 = vadd.f32 %v396_v55, %v312_v50  ;;  %2756 = vmatmul.msk.bf16.gmra.mxu0 %vm256_vm1, %v712_v48  ;;  %v1081_v48 = vld [vmem:[%s3109_s23 + $0x25] sm:$0xff]  ;;  %v714_v55 = vpack.c.bf16 %v705_v45, %v704_v44 }
  0xcd   : > { %2737 = vmatmul.msk.bf16.gmra.mxu2 %vm256_vm1, %v581_v31  ;;  %v1961_v31 = vsel %vm284_vm0, %v2838_v27, 0  ;;  %v1099_v2 = vpack.c.bf16 %v1082_v49, %v1081_v48 }
  0xce   : > { %2766 = vmatmul.msk.bf16.gmra.mxu1 %vm256_vm1, %v3290_v52  ;;  %2747 = vmatmul.msk.bf16.gmra.mxu3 %vm256_vm1, %v582_v56 }
  0xcf   : > { %1970 = vmatpush.bf16.msrb.mxu1 %v1961_v31 }
  0xd0   : > { %v337_v59 = vpop.f32.mrf.mxu2 }
  0xd1   : > { %v421_v61 = vpop.f32.mrf.mxu3  ;;  %v314_v62 = vpop.f32.mrf.mxu0 }
  0xd2   : > { %v3301_v63 = vadd.f32 %v421_v61, %v337_v59 }
  0xd3   : > { %v398_v0 = vpop.f32.mrf.mxu1 }
  0xd4   : > { %v3303_v1 = vadd.f32 %v398_v0, %v314_v62  ;;  %v3351_v62 = vpack.c.bf16 %v836_v47, %v835_v46 }
  0xd8   : > { %v339_v16 = vpop.f32.mrf.mxu2 }
  0xd9   : > { %v423_v19 = vpop.f32.mrf.mxu3  ;;  %v317_v20 = vpop.f32.mrf.mxu0 }
  0xda   : > { %v3321_v22 = vadd.f32 %v423_v19, %v339_v16  ;;  %v1212_v16 = vld [vmem:[%s3109_s23 + $0x26] sm:$0xff]  ;;  %v1449_v19 = vld [vmem:[%s3109_s23 + $0x91] sm:$0xff] }
  0xdb   : > { %v401_v23 = vpop.f32.mrf.mxu1 }
  0xdc   : > { %v3325_v25 = vadd.f32 %v401_v23, %v317_v20  ;;  %2757 = vmatmul.msk.bf16.gmra.mxu0 %vm256_vm1, %v713_v18  ;;  %v1213_v18 = vld [vmem:[%s3109_s23 + $0x2e] sm:$0xff]  ;;  %v1450_v20 = vld [vmem:[%s3109_s23 + $0x99] sm:$0xff] }
  0xdd   : > { %2738 = vmatmul.msk.bf16.gmra.mxu2 %vm256_vm1, %v582_v56  ;;  %v1083_v23 = vld [vmem:[%s3109_s23 + $0x35] sm:$0xff] }
  0xde   : > { %2767 = vmatmul.msk.bf16.gmra.mxu1 %vm256_vm1, %v3319_v21  ;;  %2748 = vmatmul.msk.bf16.gmra.mxu3 %vm256_vm1, %v3323_v24 }
  0xe0   : > { %v494_v34 = vpop.f32.mrf.mxu2 }
  0xe1   : > { %v539_v35 = vadd.f32 %v494_v34, %v3231_v54  ;;  %v625_v36 = vpop.f32.mrf.mxu3  ;;  %v319_v38 = vpop.f32.mrf.mxu0 }
  0xe3   : > { %v403_v40 = vpop.f32.mrf.mxu1  ;;  %v670_v42 = vadd.f32 %v625_v36, %v539_v35 }
  0xe4   : > { %v3342_v43 = vadd.f32 %v403_v40, %v319_v38  ;;  %v1100_v38 = vpack.c.bf16 %v1084_v26, %v1083_v23 }
  0xe8   : > { %v496_v50 = vpop.f32.mrf.mxu2 }
  0xe9   : > { %v540_v56 = vadd.f32 %v496_v50, %v3240_v60  ;;  %v627_v59 = vpop.f32.mrf.mxu3  ;;  %v756_v61 = vpop.f32.mrf.mxu0 }
  0xea   : > { %v801_v54 = vadd.f32 %v756_v61, %v670_v42  ;;  %v1452_v61 = vld [vmem:[%s3109_s23 + $0xa9] sm:$0xff] }
  0xeb   : > { %v887_v0 = vpop.f32.mrf.mxu1  ;;  %v671_v3 = vadd.f32 %v627_v59, %v540_v56  ;;  %v1215_v56 = vld [vmem:[%s3109_s23 + $0x3e] sm:$0xff] }
  0xec   : > { %v3353_v4 = vadd.f32 %v887_v0, %v801_v54  ;;  %2758 = vmatmul.msk.bf16.gmra.mxu0 %vm256_vm1, %v714_v55  ;;  %v1214_v55 = vld [vmem:[%s3109_s23 + $0x36] sm:$0xff]  ;;  %v1451_v59 = vld [vmem:[%s3109_s23 + $0xa1] sm:$0xff]  ;;  %v1086_v54 = vld [vmem:[%s3109_s23 + $0x4d] sm:$0xff] }
  0xed   : > { %2770 = vmatmul.msk.bf16.vlgmr.msra.gmra.mxu2 %vm256_vm1, %v3203_v32  ;;  %v1230_v32 = vpack.c.bf16 %v1213_v18, %v1212_v16 }
  0xee   : > { %2768 = vmatmul.msk.bf16.gmra.mxu1 %vm256_vm1, %v3351_v62  ;;  %2780 = vmatmul.msk.bf16.vlgmr.msra.gmra.mxu3 %vm256_vm1, %v1099_v2  ;;  %v1231_v2 = vpack.c.bf16 %v1215_v56, %v1214_v55 }
  0xf0   : > { %v499_v60 = vpop.f32.mrf.mxu2 }
  0xf1   : > { %v541_v5 = vadd.f32 %v499_v60, %v3252_v11  ;;  %v630_v6 = vpop.f32.mrf.mxu3  ;;  %v758_v9 = vpop.f32.mrf.mxu0  ;;  %v1467_v11 = vpack.c.bf16 %v1450_v20, %v1449_v19 }
  0xf2   : > { %v802_v10 = vadd.f32 %v758_v9, %v671_v3 }
  0xf3   : > { %v889_v12 = vpop.f32.mrf.mxu1  ;;  %v672_v13 = vadd.f32 %v630_v6, %v541_v5 }
  0xf4   : > { %v3362_v14 = vadd.f32 %v889_v12, %v802_v10 }
  0xf8   : > { %v501_v27 = vpop.f32.mrf.mxu2 }
  0xf9   : > { %v542_v30 = vadd.f32 %v501_v27, %v3261_v17  ;;  %v632_v31 = vpop.f32.mrf.mxu3  ;;  %v761_v34 = vpop.f32.mrf.mxu0 }
  0xfa   : > { %v803_v35 = vadd.f32 %v761_v34, %v672_v13  ;;  %v1454_v34 = vld [vmem:[%s3109_s23 + $0xb9] sm:$0xff] }
  0xfb   : > { %v892_v36 = vpop.f32.mrf.mxu1  ;;  %v673_v40 = vadd.f32 %v632_v31, %v542_v30  ;;  %v1217_v30 = vld [vmem:[%s3109_s23 + $0x4e] sm:$0xff] }
  0xfc   : > { %v3371_v42 = vadd.f32 %v892_v36, %v803_v35  ;;  %2790 = vmatmul.msk.bf16.vlgmr.msra.gmra.mxu0 %vm256_vm1, %v1230_v32  ;;  %v1216_v32 = vld [vmem:[%s3109_s23 + $0x46] sm:$0xff]  ;;  %v1453_v31 = vld [vmem:[%s3109_s23 + $0xb1] sm:$0xff] }
  0xfd   : > { %2771 = vmatmul.msk.bf16.gmra.mxu2 %vm256_vm1, %v3216_v41  ;;  %v1085_v41 = vld [vmem:[%s3109_s23 + $0x45] sm:$0xff]  ;;  %v1232_v36 = vpack.c.bf16 %v1217_v30, %v1216_v32 }
  0xfe   : > { %2800 = vmatmul.msk.bf16.vlgmr.msra.gmra.mxu1 %vm256_vm1, %v1467_v11  ;;  %2781 = vmatmul.msk.bf16.gmra.mxu3 %vm256_vm1, %v1100_v38  ;;  %v1101_v10 = vpack.c.bf16 %v1086_v54, %v1085_v41  ;;  %v1088_v11 = vld [vmem:[%s3109_s23 + $0x5d] sm:$0xff] }
 0x100   : > { %v504_v17 = vpop.f32.mrf.mxu2 }
 0x101   : > { %v543_v44 = vadd.f32 %v504_v17, %v3273_v33  ;;  %v635_v45 = vpop.f32.mrf.mxu3  ;;  %v763_v46 = vpop.f32.mrf.mxu0  ;;  %v1468_v33 = vpack.c.bf16 %v1452_v61, %v1451_v59 }
 0x102   : > { %v804_v47 = vadd.f32 %v763_v46, %v673_v40 }
 0x103   : > { %v894_v48 = vpop.f32.mrf.mxu1  ;;  %v674_v49 = vadd.f32 %v635_v45, %v543_v44 }
 0x104   : > { %v3379_v50 = vadd.f32 %v894_v48, %v804_v47 }
 0x108   : > { %v506_v0 = vpop.f32.mrf.mxu2 }
 0x109   : > { %v544_v3 = vadd.f32 %v506_v0, %v3282_v39  ;;  %v637_v60 = vpop.f32.mrf.mxu3  ;;  %v766_v5 = vpop.f32.mrf.mxu0  ;;  %v1218_v0 = vld [vmem:[%s3109_s23 + $0x56] sm:$0xff] }
 0x10a   : > { %v805_v6 = vadd.f32 %v766_v5, %v674_v49  ;;  %v1090_v5 = vld [vmem:[%s3109_s23 + $0x6d] sm:$0xff] }
 0x10b   : > { %v897_v9 = vpop.f32.mrf.mxu1  ;;  %v675_v12 = vadd.f32 %v637_v60, %v544_v3  ;;  %v1455_v3 = vld [vmem:[%s3109_s23 + $0xc1] sm:$0xff]  ;;  %v1456_v60 = vld [vmem:[%s3109_s23 + $0xc9] sm:$0xff] }
 0x10c   : > { %v3388_v13 = vadd.f32 %v897_v9, %v805_v6  ;;  %2791 = vmatmul.msk.bf16.gmra.mxu0 %vm256_vm1, %v1231_v2  ;;  %v1219_v2 = vld [vmem:[%s3109_s23 + $0x5e] sm:$0xff] }
 0x10d   : > { %2772 = vmatmul.msk.bf16.gmra.mxu2 %vm256_vm1, %v3229_v51  ;;  %v1087_v51 = vld [vmem:[%s3109_s23 + $0x55] sm:$0xff]  ;;  %v1233_v6 = vpack.c.bf16 %v1219_v2, %v1218_v0 }
 0x10e   : > { %2801 = vmatmul.msk.bf16.gmra.mxu1 %vm256_vm1, %v1468_v33  ;;  %2782 = vmatmul.msk.bf16.gmra.mxu3 %vm256_vm1, %v1101_v10  ;;  %v1102_v46 = vpack.c.bf16 %v1088_v11, %v1087_v51  ;;  %v1220_v11 = vld [vmem:[%s3109_s23 + $0x66] sm:$0xff] }
 0x110   : > { %v509_v39 = vpop.f32.mrf.mxu2 }
 0x111   : > { %v545_v16 = vadd.f32 %v509_v39, %v3294_v57  ;;  %v640_v18 = vpop.f32.mrf.mxu3  ;;  %v768_v19 = vpop.f32.mrf.mxu0  ;;  %v1469_v57 = vpack.c.bf16 %v1454_v34, %v1453_v31 }
 0x112   : > { %v806_v20 = vadd.f32 %v768_v19, %v675_v12 }
 0x113   : > { %v899_v23 = vpop.f32.mrf.mxu1  ;;  %v676_v26 = vadd.f32 %v640_v18, %v545_v16 }
 0x114   : > { %v3396_v27 = vadd.f32 %v899_v23, %v806_v20 }
 0x118   : > { %v511_v35 = vpop.f32.mrf.mxu2 }
 0x119   : > { %v546_v38 = vadd.f32 %v511_v35, %v3303_v1  ;;  %v642_v40 = vpop.f32.mrf.mxu3  ;;  %v771_v17 = vpop.f32.mrf.mxu0  ;;  %v1221_v35 = vld [vmem:[%s3109_s23 + $0x6e] sm:$0xff] }
 0x11a   : > { %v807_v44 = vadd.f32 %v771_v17, %v676_v26 }
 0x11b   : > { %v902_v45 = vpop.f32.mrf.mxu1  ;;  %v677_v47 = vadd.f32 %v642_v40, %v546_v38  ;;  %v1458_v38 = vld [vmem:[%s3109_s23 + $0xd9] sm:$0xff] }
 0x11c   : > { %v3405_v48 = vadd.f32 %v902_v45, %v807_v44  ;;  %2792 = vmatmul.msk.bf16.gmra.mxu0 %vm256_vm1, %v1232_v36  ;;  %v1457_v36 = vld [vmem:[%s3109_s23 + $0xd1] sm:$0xff]  ;;  %v1092_v40 = vld [vmem:[%s3109_s23 + $0x7d] sm:$0xff] }
 0x11d   : > { %2773 = vmatmul.msk.bf16.gmra.mxu2 %vm256_vm1, %v3248_v7  ;;  %v1089_v7 = vld [vmem:[%s3109_s23 + $0x65] sm:$0xff] }
 0x11e   : > { %2802 = vmatmul.msk.bf16.gmra.mxu1 %vm256_vm1, %v1469_v57  ;;  %2783 = vmatmul.msk.bf16.gmra.mxu3 %vm256_vm1, %v1102_v46  ;;  %v1103_v18 = vpack.c.bf16 %v1090_v5, %v1089_v7  ;;  %v1234_v57 = vpack.c.bf16 %v1221_v35, %v1220_v11  ;;  %v1222_v7 = vld [vmem:[%s3109_s23 + $0x76] sm:$0xff]  ;;  %v1223_v5 = vld [vmem:[%s3109_s23 + $0x7e] sm:$0xff] }
 0x120   : > { %v514_v1 = vpop.f32.mrf.mxu2 }
 0x121   : > { %v547_v49 = vadd.f32 %v514_v1, %v3325_v25  ;;  %v645_v55 = vpop.f32.mrf.mxu3  ;;  %v773_v56 = vpop.f32.mrf.mxu0  ;;  %v1470_v25 = vpack.c.bf16 %v1456_v60, %v1455_v3 }
 0x122   : > { %v808_v59 = vadd.f32 %v773_v56, %v677_v47 }
 0x123   : > { %v904_v61 = vpop.f32.mrf.mxu1  ;;  %v678_v41 = vadd.f32 %v645_v55, %v547_v49 }
 0x124   : > { %v3413_v54 = vadd.f32 %v904_v61, %v808_v59 }
 0x128   : > { %v516_v33 = vpop.f32.mrf.mxu2 }
 0x129   : > { %v548_v9 = vadd.f32 %v516_v33, %v3342_v43  ;;  %v647_v10 = vpop.f32.mrf.mxu3  ;;  %v776_v12 = vpop.f32.mrf.mxu0  ;;  %v1459_v33 = vld [vmem:[%s3109_s23 + $0xe1] sm:$0xff] }
 0x12a   : > { %v809_v39 = vadd.f32 %v776_v12, %v678_v41  ;;  %v1235_v12 = vpack.c.bf16 %v1223_v5, %v1222_v7 }
 0x12b   : > { %v907_v16 = vpop.f32.mrf.mxu1  ;;  %v679_v19 = vadd.f32 %v647_v10, %v548_v9  ;;  %v1094_v9 = vld [vmem:[%s3109_s23 + $0x8d] sm:$0xff] }
 0x12c   : > { %v3422_v20 = vadd.f32 %v907_v16, %v809_v39  ;;  %2793 = vmatmul.msk.bf16.gmra.mxu0 %vm256_vm1, %v1233_v6  ;;  %v1460_v6 = vld [vmem:[%s3109_s23 + $0xe9] sm:$0xff] }
 0x12d   : > { %2774 = vmatmul.msk.bf16.gmra.mxu2 %vm256_vm1, %v3269_v28  ;;  %v1091_v28 = vld [vmem:[%s3109_s23 + $0x75] sm:$0xff] }
 0x12e   : > { %2803 = vmatmul.msk.bf16.gmra.mxu1 %vm256_vm1, %v1470_v25  ;;  %2784 = vmatmul.msk.bf16.gmra.mxu3 %vm256_vm1, %v1103_v18  ;;  %v1104_v49 = vpack.c.bf16 %v1092_v40, %v1091_v28  ;;  %v1225_v28 = vld [vmem:[%s3109_s23 + $0x8e] sm:$0xff] }
 0x12f   : > { %v1461_v40 = vld [vmem:[%s3109_s23 + $0xf1] sm:$0xff] }
 0x130   : > { %v519_v43 = vpop.f32.mrf.mxu2 }
 0x131   : > { %v549_v23 = vadd.f32 %v519_v43, %v3238_v58  ;;  %v650_v26 = vpop.f32.mrf.mxu3  ;;  %v778_v32 = vpop.f32.mrf.mxu0  ;;  %v1471_v58 = vpack.c.bf16 %v1458_v38, %v1457_v36  ;;  %v1224_v38 = vld [vmem:[%s3109_s23 + $0x86] sm:$0xff] }
 0x132   : > { %v810_v30 = vadd.f32 %v778_v32, %v679_v19 }
 0x133   : > { %v909_v31 = vpop.f32.mrf.mxu1  ;;  %v680_v34 = vadd.f32 %v650_v26, %v549_v23 }
 0x134   : > { %v3430_v51 = vadd.f32 %v909_v31, %v810_v30 }
 0x138   : > { %v521_v17 = vpop.f32.mrf.mxu2 }
 0x139   : > { %v550_v44 = vadd.f32 %v521_v17, %v3250_v8  ;;  %v652_v45 = vpop.f32.mrf.mxu3  ;;  %v781_v46 = vpop.f32.mrf.mxu0  ;;  %v1462_v17 = vld [vmem:[%s3109_s23 + $0xf9] sm:$0xff] }
 0x13a   : > { %v811_v47 = vadd.f32 %v781_v46, %v680_v34 }
 0x13b   : > { %v912_v1 = vpop.f32.mrf.mxu1  ;;  %v681_v55 = vadd.f32 %v652_v45, %v550_v44  ;;  %v1236_v45 = vpack.c.bf16 %v1225_v28, %v1224_v38 }
 0x13c   : > { %v3439_v56 = vadd.f32 %v912_v1, %v811_v47  ;;  %2794 = vmatmul.msk.bf16.gmra.mxu0 %vm256_vm1, %v1234_v57  ;;  %v1096_v57 = vld [vmem:[%s3109_s23 + $0x9d] sm:$0xff] }
 0x13d   : > { %2775 = vmatmul.msk.bf16.gmra.mxu2 %vm256_vm1, %v3290_v52  ;;  %v1093_v52 = vld [vmem:[%s3109_s23 + $0x85] sm:$0xff] }
 0x13e   : > { %2804 = vmatmul.msk.bf16.gmra.mxu1 %vm256_vm1, %v1471_v58  ;;  %2785 = vmatmul.msk.bf16.gmra.mxu3 %vm256_vm1, %v1104_v49  ;;  %v1105_v43 = vpack.c.bf16 %v1094_v9, %v1093_v52  ;;  %v967_v52 = vld [vmem:[%s3109_s23 + $0xac] sm:$0xff]  ;;  %v1463_v9 = vld [vmem:[%s3109_s23 + $0x101] sm:$0xff] }
 0x140   : > { %v524_v8 = vpop.f32.mrf.mxu2 }
 0x141   : > { %v551_v59 = vadd.f32 %v524_v8, %v3259_v15  ;;  %v655_v61 = vpop.f32.mrf.mxu3  ;;  %v783_v41 = vpop.f32.mrf.mxu0  ;;  %v1472_v15 = vpack.c.bf16 %v1460_v6, %v1459_v33  ;;  %v966_v33 = vld [vmem:[%s3109_s23 + $0xa4] sm:$0xff]  ;;  %v1226_v6 = vld [vmem:[%s3109_s23 + $0x96] sm:$0xff] }
 0x142   : > { %v812_v0 = vadd.f32 %v783_v41, %v681_v55 }
 0x143   : > { %v914_v2 = vpop.f32.mrf.mxu1  ;;  %v682_v3 = vadd.f32 %v655_v61, %v551_v59 }
 0x144   : > { %v3447_v60 = vadd.f32 %v914_v2, %v812_v0 }
 0x148   : > { %v526_v10 = vpop.f32.mrf.mxu2 }
 0x149   : > { %v552_v25 = vadd.f32 %v526_v10, %v3271_v29  ;;  %v657_v39 = vpop.f32.mrf.mxu3  ;;  %v786_v16 = vpop.f32.mrf.mxu0  ;;  %v1464_v10 = vld [vmem:[%s3109_s23 + $0x109] sm:$0xff] }
 0x14a   : > { %v813_v18 = vadd.f32 %v786_v16, %v682_v3 }
 0x14b   : > { %v917_v19 = vpop.f32.mrf.mxu1  ;;  %v683_v23 = vadd.f32 %v657_v39, %v552_v25  ;;  %v1098_v25 = vld [vmem:[%s3109_s23 + $0xad] sm:$0xff] }
 0x14c   : > { %v3456_v26 = vadd.f32 %v917_v19, %v813_v18  ;;  %2795 = vmatmul.msk.bf16.gmra.mxu0 %vm256_vm1, %v1235_v12  ;;  %v1097_v12 = vld [vmem:[%s3109_s23 + $0xa5] sm:$0xff]  ;;  %v3492_v19 = vpack.c.bf16 %v967_v52, %v966_v33 }
 0x14d   : > { %2776 = vmatmul.msk.bf16.gmra.mxu2 %vm256_vm1, %v3319_v21  ;;  %v1095_v21 = vld [vmem:[%s3109_s23 + $0x95] sm:$0xff] }
 0x14e   : > { %2805 = vmatmul.msk.bf16.gmra.mxu1 %vm256_vm1, %v1472_v15  ;;  %2786 = vmatmul.msk.bf16.gmra.mxu3 %vm256_vm1, %v1105_v43  ;;  %v1106_v55 = vpack.c.bf16 %v1096_v57, %v1095_v21  ;;  %v1474_v43 = vpack.c.bf16 %v1464_v10, %v1463_v9  ;;  %v2868_v57 = vld [vmem:[%s4001_s1 + $0xe] sm:$0x3] }
 0x150   : > { %v529_v29 = vpop.f32.mrf.mxu2 }
 0x151   : > { %v553_v32 = vadd.f32 %v529_v29, %v3280_v37  ;;  %v660_v30 = vpop.f32.mrf.mxu3  ;;  %v788_v31 = vpop.f32.mrf.mxu0  ;;  %v1473_v37 = vpack.c.bf16 %v1462_v17, %v1461_v40 }
 0x152   : > { %v814_v34 = vadd.f32 %v788_v31, %v683_v23  ;;  %v2858_v31 = vld [vmem:[%s4001_s1 + $0xc] sm:$0x3] }
 0x153   : > { %v919_v11 = vpop.f32.mrf.mxu1  ;;  %v684_v35 = vadd.f32 %v660_v30, %v553_v32  ;;  %v1107_v32 = vpack.c.bf16 %v1098_v25, %v1097_v12  ;;  %v2848_v30 = vld [vmem:[%s4001_s1 + $0xa] sm:$0x3] }
 0x154   : > { %v3464_v36 = vadd.f32 %v919_v11, %v814_v34  ;;  %v2091_v11 = vsel %vm284_vm0, %v2848_v30, 0 }
 0x155   : > { %2100 = vmatpush.bf16.msra.mxu2 %v2091_v11  ;;  %v1906_v11 = vld [vmem:[%s3109_s23 + $0xab] sm:$0xff] }
 0x158   : > { %v531_v44 = vpop.f32.mrf.mxu2 }
 0x159   : > { %v554_v46 = vadd.f32 %v531_v44, %v3292_v53  ;;  %v662_v58 = vpop.f32.mrf.mxu3  ;;  %v791_v47 = vpop.f32.mrf.mxu0  ;;  %v2878_v44 = vld [vmem:[%s4001_s1 + $0x10] sm:$0x3] }
 0x15a   : > { %v815_v1 = vadd.f32 %v791_v47, %v684_v35  ;;  %v2221_v35 = vsel %vm284_vm0, %v2858_v31, 0  ;;  %v1424_v31 = vld [vmem:[%s3109_s23 + $0xa8] sm:$0xff] }
 0x15b   : > { %v922_v49 = vpop.f32.mrf.mxu1  ;;  %v685_v8 = vadd.f32 %v662_v58, %v554_v46  ;;  %2230 = vmatpush.bf16.msra.mxu3 %v2221_v35  ;;  %v2481_v46 = vsel %vm284_vm0, %v2878_v44, 0 }
 0x15c   : > { %v3473_v59 = vadd.f32 %v922_v49, %v815_v1  ;;  %2796 = vmatmul.msk.bf16.gmra.mxu0 %vm256_vm1, %v1236_v45  ;;  %v2351_v45 = vsel %vm284_vm0, %v2868_v57, 0  ;;  %2490 = vmatpush.bf16.msra.mxu1 %v2481_v46  ;;  %v1229_v1 = vld [vmem:[%s3109_s23 + $0xae] sm:$0xff] }
 0x15d   : > { %2777 = vmatmul.msk.bf16.gmra.mxu2 %vm256_vm1, %v3351_v62  ;;  %v1227_v62 = vld [vmem:[%s3109_s23 + $0x9e] sm:$0xff]  ;;  %2360 = vmatpush.bf16.msra.mxu0 %v2351_v45  ;;  %v1465_v49 = vld [vmem:[%s3109_s23 + $0x111] sm:$0xff] }
 0x15e   : > { %2806 = vmatmul.msk.bf16.gmra.mxu1 %vm256_vm1, %v1473_v37  ;;  %2787 = vmatmul.msk.bf16.gmra.mxu3 %vm256_vm1, %v1106_v55  ;;  %v1237_v16 = vpack.c.bf16 %v1227_v62, %v1226_v6  ;;  %v1228_v37 = vld [vmem:[%s3109_s23 + $0xa6] sm:$0xff]  ;;  %v1466_v55 = vld [vmem:[%s3109_s23 + $0x119] sm:$0xff] }
 0x15f   : > { %v3535_v62 = vld [vmem:[%s4003_s3] ss:$0 sm:$0xff] }
 0x160   : > { %v534_v53 = vpop.f32.mrf.mxu2 }
 0x161   : > { %v555_v61 = vadd.f32 %v534_v53, %v3301_v63  ;;  %v665_v41 = vpop.f32.mrf.mxu3  ;;  %v793_v0 = vpop.f32.mrf.mxu0  ;;  %v1422_v53 = vld [vmem:[%s3109_s23 + $0x98] sm:$0xff] }
 0x162   : > { %v816_v2 = vadd.f32 %v793_v0, %v685_v8  ;;  %v1421_v8 = vld [vmem:[%s3109_s23 + $0x90] sm:$0xff]  ;;  %v3530_v0 = vld [vmem:[%s4002_s2] ss:$0 sm:$0xff] }
 0x163   : > { %v924_v3 = vpop.f32.mrf.mxu1  ;;  %v686_v7 = vadd.f32 %v665_v41, %v555_v61  ;;  %v1439_v33 = vpack.c.bf16 %v1422_v53, %v1421_v8 }
 0x164   : > { %v3481_v5 = vadd.f32 %v924_v3, %v816_v2 }
 0x168   : > { %v536_v39 = vpop.f32.mrf.mxu2 }
 0x169   : > { %v556_v15 = vadd.f32 %v536_v39, %v3321_v22  ;;  %v667_v63 = vpop.f32.mrf.mxu3  ;;  %v796_v18 = vpop.f32.mrf.mxu0 }
 0x16a   : > { %v817_v23 = vadd.f32 %v796_v18, %v686_v7  ;;  %v1475_v7 = vpack.c.bf16 %v1466_v55, %v1465_v49 }
 0x16b   : > { %v927_v29 = vpop.f32.mrf.mxu1  ;;  %v687_v34 = vadd.f32 %v667_v63, %v556_v15 }
 0x16c   : > { %v3501_v22 = vadd.f32 %v927_v29, %v817_v23  ;;  %2797 = vmatmul.msk.bf16.gmra.mxu0 %vm256_vm1, %v1237_v16  ;;  %v1647_v29 = vld [vmem:[%s3109_s23 + $0xa2] sm:$0xff] }
 0x16d   : > { %2778 = vmatmul.msk.bf16.gmra.mxu2 %vm256_vm1, %v3492_v19 }
 0x16e   : > { %2807 = vmatmul.msk.bf16.gmra.mxu1 %vm256_vm1, %v1474_v43  ;;  %2788 = vmatmul.msk.bf16.gmra.mxu3 %vm256_vm1, %v1107_v32  ;;  %v1648_v32 = vld [vmem:[%s3109_s23 + $0xaa] sm:$0xff] }
 0x170   : > { %v1018_v38 = vpop.f32.mrf.mxu2 }
 0x171   : > { %v1149_v28 = vpop.f32.mrf.mxu3  ;;  %v798_v40 = vpop.f32.mrf.mxu0  ;;  %v1063_v58 = vadd.f32 %v1018_v38, %v3353_v4  ;;  %v1238_v4 = vpack.c.bf16 %v1229_v1, %v1228_v37 }
 0x172   : > { %v818_v17 = vadd.f32 %v798_v40, %v687_v34  ;;  %v1905_v34 = vld [vmem:[%s3109_s23 + $0xa3] sm:$0xff]  ;;  %v1664_v40 = vpack.c.bf16 %v1648_v32, %v1647_v29 }
 0x173   : > { %v929_v21 = vpop.f32.mrf.mxu1  ;;  %v1194_v61 = vadd.f32 %v1149_v28, %v1063_v58  ;;  %v1923_v44 = vpack.c.bf16 %v1906_v11, %v1905_v34 }
 0x174   : > { %v3518_v47 = vadd.f32 %v929_v21, %v818_v17 }
 0x178   : > { %v1020_v41 = vpop.f32.mrf.mxu2 }
 0x179   : > { %v1151_v2 = vpop.f32.mrf.mxu3  ;;  %v1280_v3 = vpop.f32.mrf.mxu0  ;;  %v1064_v9 = vadd.f32 %v1020_v41, %v3362_v14 }
 0x17a   : > { %v1325_v6 = vadd.f32 %v1280_v3, %v1194_v61  ;;  %v1649_v3 = vld [vmem:[%s3109_s23 + $0xb2] sm:$0xff] }
 0x17b   : > { %v3537_v52 = vpop.f32.mrf.mxu1  ;;  %v1195_v25 = vadd.f32 %v1151_v2, %v1064_v9  ;;  %v1425_v2 = vld [vmem:[%s3109_s23 + $0xb0] sm:$0xff] }
 0x17c   : > { %v1346_v10 = vmul.f32 %v3530_v0, %v1325_v6  ;;  %2798 = vmatmul.msk.bf16.gmra.mxu0 %vm256_vm1, %v1238_v4  ;;  %v1426_v6 = vld [vmem:[%s3109_s23 + $0xb8] sm:$0xff] }
 0x17d   : > { %2809 = vmatmul.msk.bf16.vlgmr.msrb.gmra.mxu2 %vm256_vm1, %v1439_v33  ;;  %v1907_v9 = vld [vmem:[%s3109_s23 + $0xb3] sm:$0xff] }
 0x17e   : > { %2808 = vmatmul.msk.bf16.gmra.mxu1 %vm256_vm1, %v1475_v7  ;;  %v1367_v12 = vadd.f32 %v3535_v62, %v1346_v10  ;;  %2819 = vmatmul.msk.bf16.vlgmr.msrb.gmra.mxu3 %vm256_vm1, %v3323_v24  ;;  %v1423_v24 = vld [vmem:[%s3109_s23 + $0xa0] sm:$0xff] }
 0x17f   : > { %v1440_v57 = vpack.c.bf16 %v1424_v31, %v1423_v24  ;;  %v1650_v7 = vld [vmem:[%s3109_s23 + $0xba] sm:$0xff] }
 0x180   : > { %v1385_v14 = vmax.f32 %v1367_v12, 0.0  ;;  %v1023_v39 = vpop.f32.mrf.mxu2  ;;  %v1908_v10 = vld [vmem:[%s3109_s23 + $0xbb] sm:$0xff] }
 0x181   : > { %v1154_v16 = vpop.f32.mrf.mxu3  ;;  %v1282_v15 = vpop.f32.mrf.mxu0  ;;  %v1065_v43 = vadd.f32 %v1023_v39, %v3371_v42  ;;  %v1665_v39 = vpack.c.bf16 %v1650_v7, %v1649_v3 }
 0x182   : > { %1403 = vst [vmem:[%s3549_s20] sm:$0xff] %v1385_v14  ;;  %v1326_v63 = vadd.f32 %v1282_v15, %v1195_v25 }
 0x183   : > { %v3552_v18 = vpop.f32.mrf.mxu1  ;;  %v1196_v35 = vadd.f32 %v1154_v16, %v1065_v43  ;;  %v1924_v43 = vpack.c.bf16 %v1908_v10, %v1907_v9 }
 0x184   : > { %v1347_v23 = vmul.f32 %v3530_v0, %v1326_v63  ;;  %v1441_v63 = vpack.c.bf16 %v1426_v6, %v1425_v2 }
 0x186   : > { %v1368_v30 = vadd.f32 %v3535_v62, %v1347_v23 }
 0x188   : > { %v1386_v38 = vmax.f32 %v1368_v30, 0.0  ;;  %v1025_v28 = vpop.f32.mrf.mxu2 }
 0x189   : > { %v1156_v17 = vpop.f32.mrf.mxu3  ;;  %v1285_v21 = vpop.f32.mrf.mxu0  ;;  %v1066_v46 = vadd.f32 %v1025_v28, %v3379_v50 }
 0x18a   : > { %1404 = vst [vmem:[%s3549_s20 + $0x8] sm:$0xff] %v1386_v38  ;;  %v1327_v42 = vadd.f32 %v1285_v21, %v1196_v35  ;;  %v1651_v21 = vld [vmem:[%s3109_s23 + $0xc2] sm:$0xff] }
 0x18b   : > { %v3564_v45 = vpop.f32.mrf.mxu1  ;;  %v1197_v1 = vadd.f32 %v1156_v17, %v1066_v46  ;;  %v1427_v17 = vld [vmem:[%s3109_s23 + $0xc0] sm:$0xff] }
 0x18c   : > { %v1348_v58 = vmul.f32 %v3530_v0, %v1327_v42  ;;  %2829 = vmatmul.msk.bf16.vlgmr.msrb.gmra.mxu0 %vm256_vm1, %v1664_v40  ;;  %v1428_v42 = vld [vmem:[%s3109_s23 + $0xc8] sm:$0xff] }
 0x18d   : > { %2810 = vmatmul.msk.bf16.gmra.mxu2 %vm256_vm1, %v1440_v57  ;;  %v1652_v57 = vld [vmem:[%s3109_s23 + $0xca] sm:$0xff] }
 0x18e   : > { %2839 = vmatmul.msk.bf16.vlgmr.msrb.gmra.mxu1 %vm256_vm1, %v1923_v44  ;;  %v1369_v37 = vadd.f32 %v3535_v62, %v1348_v58  ;;  %2820 = vmatmul.msk.bf16.gmra.mxu3 %vm256_vm1, %v1664_v40  ;;  %v1909_v46 = vld [vmem:[%s3109_s23 + $0xc3] sm:$0xff]  ;;  %v1910_v58 = vld [vmem:[%s3109_s23 + $0xcb] sm:$0xff] }
 0x190   : > { %v1387_v50 = vmax.f32 %v1369_v37, 0.0  ;;  %v1028_v49 = vpop.f32.mrf.mxu2 }
 0x191   : > { %v1159_v55 = vpop.f32.mrf.mxu3  ;;  %v1287_v8 = vpop.f32.mrf.mxu0  ;;  %v1067_v41 = vadd.f32 %v1028_v49, %v3388_v13  ;;  %v1666_v49 = vpack.c.bf16 %v1652_v57, %v1651_v21 }
 0x192   : > { %1405 = vst [vmem:[%s3549_s20 + $0x10] sm:$0xff] %v1387_v50  ;;  %v1328_v53 = vadd.f32 %v1287_v8, %v1197_v1 }
 0x193   : > { %v3574_v61 = vpop.f32.mrf.mxu1  ;;  %v1198_v12 = vadd.f32 %v1159_v55, %v1067_v41  ;;  %v1925_v41 = vpack.c.bf16 %v1910_v58, %v1909_v46 }
 0x194   : > { %v1349_v4 = vmul.f32 %v3530_v0, %v1328_v53  ;;  %v1442_v53 = vpack.c.bf16 %v1428_v42, %v1427_v17 }
 0x196   : > { %v1370_v33 = vadd.f32 %v3535_v62, %v1349_v4 }
 0x198   : > { %v1388_v25 = vmax.f32 %v1370_v33, 0.0  ;;  %v1030_v14 = vpop.f32.mrf.mxu2 }
 0x199   : > { %v1161_v16 = vpop.f32.mrf.mxu3  ;;  %v1290_v15 = vpop.f32.mrf.mxu0  ;;  %v1068_v24 = vadd.f32 %v1030_v14, %v3396_v27 }
 0x19a   : > { %1406 = vst [vmem:[%s3549_s20 + $0x18] sm:$0xff] %v1388_v25  ;;  %v1329_v13 = vadd.f32 %v1290_v15, %v1198_v12  ;;  %v1653_v15 = vld [vmem:[%s3109_s23 + $0xd2] sm:$0xff] }
 0x19b   : > { %v3586_v23 = vpop.f32.mrf.mxu1  ;;  %v1199_v30 = vadd.f32 %v1161_v16, %v1068_v24  ;;  %v1429_v16 = vld [vmem:[%s3109_s23 + $0xd0] sm:$0xff] }
 0x19c   : > { %v1350_v29 = vmul.f32 %v3530_v0, %v1329_v13  ;;  %2830 = vmatmul.msk.bf16.gmra.mxu0 %vm256_vm1, %v1665_v39  ;;  %v1430_v13 = vld [vmem:[%s3109_s23 + $0xd8] sm:$0xff] }
 0x19d   : > { %2811 = vmatmul.msk.bf16.gmra.mxu2 %vm256_vm1, %v1441_v63  ;;  %v1654_v63 = vld [vmem:[%s3109_s23 + $0xda] sm:$0xff] }
 0x19e   : > { %2840 = vmatmul.msk.bf16.gmra.mxu1 %vm256_vm1, %v1924_v43  ;;  %v1371_v32 = vadd.f32 %v3535_v62, %v1350_v29  ;;  %2821 = vmatmul.msk.bf16.gmra.mxu3 %vm256_vm1, %v1665_v39  ;;  %v1911_v24 = vld [vmem:[%s3109_s23 + $0xd3] sm:$0xff]  ;;  %v1912_v29 = vld [vmem:[%s3109_s23 + $0xdb] sm:$0xff] }
 0x1a0   : > { %v1389_v27 = vmax.f32 %v1371_v32, 0.0  ;;  %v1033_v31 = vpop.f32.mrf.mxu2 }
 0x1a1   : > { %v1164_v34 = vpop.f32.mrf.mxu3  ;;  %v1292_v11 = vpop.f32.mrf.mxu0  ;;  %v1069_v28 = vadd.f32 %v1033_v31, %v3405_v48  ;;  %v1667_v31 = vpack.c.bf16 %v1654_v63, %v1653_v15 }
 0x1a2   : > { %1407 = vst [vmem:[%s3549_s20 + $0x20] sm:$0xff] %v1389_v27  ;;  %v1330_v35 = vadd.f32 %v1292_v11, %v1199_v30 }
 0x1a3   : > { %v3596_v38 = vpop.f32.mrf.mxu1  ;;  %v1200_v37 = vadd.f32 %v1164_v34, %v1069_v28  ;;  %v1926_v28 = vpack.c.bf16 %v1912_v29, %v1911_v24 }
 0x1a4   : > { %v1351_v40 = vmul.f32 %v3530_v0, %v1330_v35  ;;  %v1443_v35 = vpack.c.bf16 %v1430_v13, %v1429_v16 }
 0x1a6   : > { %v1372_v44 = vadd.f32 %v3535_v62, %v1351_v40 }
 0x1a8   : > { %v1390_v1 = vmax.f32 %v1372_v44, 0.0  ;;  %v1035_v50 = vpop.f32.mrf.mxu2 }
 0x1a9   : > { %v1166_v55 = vpop.f32.mrf.mxu3  ;;  %v1295_v8 = vpop.f32.mrf.mxu0  ;;  %v1070_v2 = vadd.f32 %v1035_v50, %v3413_v54 }
 0x1aa   : > { %1408 = vst [vmem:[%s3549_s20 + $0x28] sm:$0xff] %v1390_v1  ;;  %v1331_v48 = vadd.f32 %v1295_v8, %v1200_v37  ;;  %v1655_v8 = vld [vmem:[%s3109_s23 + $0xe2] sm:$0xff] }
 0x1ab   : > { %v3608_v4 = vpop.f32.mrf.mxu1  ;;  %v1201_v33 = vadd.f32 %v1166_v55, %v1070_v2  ;;  %v1431_v55 = vld [vmem:[%s3109_s23 + $0xe0] sm:$0xff] }
 0x1ac   : > { %v1352_v3 = vmul.f32 %v3530_v0, %v1331_v48  ;;  %2831 = vmatmul.msk.bf16.gmra.mxu0 %vm256_vm1, %v1666_v49  ;;  %v1432_v48 = vld [vmem:[%s3109_s23 + $0xe8] sm:$0xff] }
 0x1ad   : > { %2812 = vmatmul.msk.bf16.gmra.mxu2 %vm256_vm1, %v1442_v53  ;;  %v1656_v53 = vld [vmem:[%s3109_s23 + $0xea] sm:$0xff] }
 0x1ae   : > { %2841 = vmatmul.msk.bf16.gmra.mxu1 %vm256_vm1, %v1925_v41  ;;  %v1373_v7 = vadd.f32 %v3535_v62, %v1352_v3  ;;  %2822 = vmatmul.msk.bf16.gmra.mxu3 %vm256_vm1, %v1666_v49  ;;  %v1913_v2 = vld [vmem:[%s3109_s23 + $0xe3] sm:$0xff]  ;;  %v1914_v3 = vld [vmem:[%s3109_s23 + $0xeb] sm:$0xff] }
 0x1b0   : > { %v1391_v54 = vmax.f32 %v1373_v7, 0.0  ;;  %v1038_v6 = vpop.f32.mrf.mxu2 }
 0x1b1   : > { %v1169_v9 = vpop.f32.mrf.mxu3  ;;  %v1297_v10 = vpop.f32.mrf.mxu0  ;;  %v1071_v14 = vadd.f32 %v1038_v6, %v3422_v20  ;;  %v1668_v6 = vpack.c.bf16 %v1656_v53, %v1655_v8 }
 0x1b2   : > { %1409 = vst [vmem:[%s3549_s20 + $0x30] sm:$0xff] %v1391_v54  ;;  %v1332_v12 = vadd.f32 %v1297_v10, %v1201_v33 }
 0x1b3   : > { %v3618_v25 = vpop.f32.mrf.mxu1  ;;  %v1202_v32 = vadd.f32 %v1169_v9, %v1071_v14  ;;  %v1927_v14 = vpack.c.bf16 %v1914_v3, %v1913_v2 }
 0x1b4   : > { %v1353_v39 = vmul.f32 %v3530_v0, %v1332_v12  ;;  %v1444_v12 = vpack.c.bf16 %v1432_v48, %v1431_v55 }
 0x1b6   : > { %v1374_v43 = vadd.f32 %v3535_v62, %v1353_v39 }
 0x1b8   : > { %v1392_v30 = vmax.f32 %v1374_v43, 0.0  ;;  %v1040_v27 = vpop.f32.mrf.mxu2 }
 0x1b9   : > { %v1171_v34 = vpop.f32.mrf.mxu3  ;;  %v1300_v11 = vpop.f32.mrf.mxu0  ;;  %v1072_v17 = vadd.f32 %v1040_v27, %v3430_v51 }
 0x1ba   : > { %1410 = vst [vmem:[%s3549_s20 + $0x38] sm:$0xff] %v1392_v30  ;;  %v1333_v20 = vadd.f32 %v1300_v11, %v1202_v32  ;;  %v1657_v11 = vld [vmem:[%s3109_s23 + $0xf2] sm:$0xff] }
 0x1bb   : > { %v3630_v40 = vpop.f32.mrf.mxu1  ;;  %v1203_v44 = vadd.f32 %v1171_v34, %v1072_v17  ;;  %v1433_v34 = vld [vmem:[%s3109_s23 + $0xf0] sm:$0xff] }
 0x1bc   : > { %v1354_v21 = vmul.f32 %v3530_v0, %v1333_v20  ;;  %2832 = vmatmul.msk.bf16.gmra.mxu0 %vm256_vm1, %v1667_v31  ;;  %v1434_v20 = vld [vmem:[%s3109_s23 + $0xf8] sm:$0xff] }
 0x1bd   : > { %2813 = vmatmul.msk.bf16.gmra.mxu2 %vm256_vm1, %v1443_v35  ;;  %v1658_v35 = vld [vmem:[%s3109_s23 + $0xfa] sm:$0xff] }
 0x1be   : > { %2842 = vmatmul.msk.bf16.gmra.mxu1 %vm256_vm1, %v1926_v28  ;;  %v1375_v57 = vadd.f32 %v3535_v62, %v1354_v21  ;;  %2823 = vmatmul.msk.bf16.gmra.mxu3 %vm256_vm1, %v1667_v31  ;;  %v1915_v17 = vld [vmem:[%s3109_s23 + $0xf3] sm:$0xff]  ;;  %v1916_v21 = vld [vmem:[%s3109_s23 + $0xfb] sm:$0xff] }
 0x1c0   : > { %v1393_v51 = vmax.f32 %v1375_v57, 0.0  ;;  %v1043_v42 = vpop.f32.mrf.mxu2 }
 0x1c1   : > { %v1174_v46 = vpop.f32.mrf.mxu3  ;;  %v1302_v58 = vpop.f32.mrf.mxu0  ;;  %v1073_v50 = vadd.f32 %v1043_v42, %v3439_v56  ;;  %v1669_v42 = vpack.c.bf16 %v1658_v35, %v1657_v11 }
 0x1c2   : > { %1411 = vst [vmem:[%s3549_s20 + $0x40] sm:$0xff] %v1393_v51  ;;  %v1334_v37 = vadd.f32 %v1302_v58, %v1203_v44 }
 0x1c3   : > { %v3640_v1 = vpop.f32.mrf.mxu1  ;;  %v1204_v7 = vadd.f32 %v1174_v46, %v1073_v50  ;;  %v1928_v50 = vpack.c.bf16 %v1916_v21, %v1915_v17 }
 0x1c4   : > { %v1355_v49 = vmul.f32 %v3530_v0, %v1334_v37  ;;  %v1445_v37 = vpack.c.bf16 %v1434_v20, %v1433_v34 }
 0x1c6   : > { %v1376_v41 = vadd.f32 %v3535_v62, %v1355_v49 }
 0x1c8   : > { %v1394_v33 = vmax.f32 %v1376_v41, 0.0  ;;  %v1045_v54 = vpop.f32.mrf.mxu2 }
 0x1c9   : > { %v1176_v9 = vpop.f32.mrf.mxu3  ;;  %v1305_v10 = vpop.f32.mrf.mxu0  ;;  %v1074_v16 = vadd.f32 %v1045_v54, %v3447_v60 }
 0x1ca   : > { %1412 = vst [vmem:[%s3549_s20 + $0x48] sm:$0xff] %v1394_v33  ;;  %v1335_v56 = vadd.f32 %v1305_v10, %v1204_v7  ;;  %v1659_v10 = vld [vmem:[%s3109_s23 + $0x102] sm:$0xff] }
 0x1cb   : > { %v3652_v39 = vpop.f32.mrf.mxu1  ;;  %v1205_v43 = vadd.f32 %v1176_v9, %v1074_v16  ;;  %v1435_v9 = vld [vmem:[%s3109_s23 + $0x100] sm:$0xff] }
 0x1cc   : > { %v1356_v15 = vmul.f32 %v3530_v0, %v1335_v56  ;;  %2833 = vmatmul.msk.bf16.gmra.mxu0 %vm256_vm1, %v1668_v6  ;;  %v1436_v56 = vld [vmem:[%s3109_s23 + $0x108] sm:$0xff] }
 0x1cd   : > { %2814 = vmatmul.msk.bf16.gmra.mxu2 %vm256_vm1, %v1444_v12  ;;  %v1660_v12 = vld [vmem:[%s3109_s23 + $0x10a] sm:$0xff] }
 0x1ce   : > { %2843 = vmatmul.msk.bf16.gmra.mxu1 %vm256_vm1, %v1927_v14  ;;  %v1377_v63 = vadd.f32 %v3535_v62, %v1356_v15  ;;  %2824 = vmatmul.msk.bf16.gmra.mxu3 %vm256_vm1, %v1668_v6  ;;  %v1917_v16 = vld [vmem:[%s3109_s23 + $0x103] sm:$0xff]  ;;  %v1918_v15 = vld [vmem:[%s3109_s23 + $0x10b] sm:$0xff] }
 0x1d0   : > { %v1395_v60 = vmax.f32 %v1377_v63, 0.0  ;;  %v1048_v13 = vpop.f32.mrf.mxu2 }
 0x1d1   : > { %v1179_v24 = vpop.f32.mrf.mxu3  ;;  %v1307_v29 = vpop.f32.mrf.mxu0  ;;  %v1075_v27 = vadd.f32 %v1048_v13, %v3456_v26  ;;  %v1670_v13 = vpack.c.bf16 %v1660_v12, %v1659_v10 }
 0x1d2   : > { %1413 = vst [vmem:[%s3549_s20 + $0x50] sm:$0xff] %v1395_v60  ;;  %v1336_v32 = vadd.f32 %v1307_v29, %v1205_v43 }
 0x1d3   : > { %v3662_v30 = vpop.f32.mrf.mxu1  ;;  %v1206_v57 = vadd.f32 %v1179_v24, %v1075_v27  ;;  %v1929_v27 = vpack.c.bf16 %v1918_v15, %v1917_v16 }
 0x1d4   : > { %v1357_v31 = vmul.f32 %v3530_v0, %v1336_v32  ;;  %v1446_v32 = vpack.c.bf16 %v1436_v56, %v1435_v9 }
 0x1d6   : > { %v1378_v28 = vadd.f32 %v3535_v62, %v1357_v31 }
 0x1d8   : > { %v1396_v44 = vmax.f32 %v1378_v28, 0.0  ;;  %v1050_v51 = vpop.f32.mrf.mxu2 }
 0x1d9   : > { %v1181_v46 = vpop.f32.mrf.mxu3  ;;  %v1310_v58 = vpop.f32.mrf.mxu0  ;;  %v1076_v55 = vadd.f32 %v1050_v51, %v3464_v36 }
 0x1da   : > { %1414 = vst [vmem:[%s3549_s20 + $0x58] sm:$0xff] %v1396_v44  ;;  %v1337_v26 = vadd.f32 %v1310_v58, %v1206_v57  ;;  %v1661_v58 = vld [vmem:[%s3109_s23 + $0x112] sm:$0xff] }
 0x1db   : > { %v3674_v49 = vpop.f32.mrf.mxu1  ;;  %v1207_v41 = vadd.f32 %v1181_v46, %v1076_v55  ;;  %v1437_v46 = vld [vmem:[%s3109_s23 + $0x110] sm:$0xff] }
 0x1dc   : > { %v1358_v8 = vmul.f32 %v3530_v0, %v1337_v26  ;;  %2834 = vmatmul.msk.bf16.gmra.mxu0 %vm256_vm1, %v1669_v42  ;;  %v1438_v26 = vld [vmem:[%s3109_s23 + $0x118] sm:$0xff] }
 0x1dd   : > { %2815 = vmatmul.msk.bf16.gmra.mxu2 %vm256_vm1, %v1445_v37  ;;  %v1662_v37 = vld [vmem:[%s3109_s23 + $0x11a] sm:$0xff] }
 0x1de   : > { %2844 = vmatmul.msk.bf16.gmra.mxu1 %vm256_vm1, %v1928_v50  ;;  %v1379_v53 = vadd.f32 %v3535_v62, %v1358_v8  ;;  %2825 = vmatmul.msk.bf16.gmra.mxu3 %vm256_vm1, %v1669_v42  ;;  %v1919_v55 = vld [vmem:[%s3109_s23 + $0x113] sm:$0xff]  ;;  %v1920_v8 = vld [vmem:[%s3109_s23 + $0x11b] sm:$0xff] }
 0x1e0   : > { %v1397_v36 = vmax.f32 %v1379_v53, 0.0  ;;  %v1053_v48 = vpop.f32.mrf.mxu2 }
 0x1e1   : > { %v1184_v2 = vpop.f32.mrf.mxu3  ;;  %v1312_v3 = vpop.f32.mrf.mxu0  ;;  %v1077_v54 = vadd.f32 %v1053_v48, %v3473_v59  ;;  %v1671_v48 = vpack.c.bf16 %v1662_v37, %v1661_v58 }
 0x1e2   : > { %1415 = vst [vmem:[%s3549_s20 + $0x60] sm:$0xff] %v1397_v36  ;;  %v1338_v7 = vadd.f32 %v1312_v3, %v1207_v41 }
 0x1e3   : > { %v3684_v33 = vpop.f32.mrf.mxu1  ;;  %v1208_v63 = vadd.f32 %v1184_v2, %v1077_v54  ;;  %v1930_v54 = vpack.c.bf16 %v1920_v8, %v1919_v55 }
 0x1e4   : > { %v1359_v6 = vmul.f32 %v3530_v0, %v1338_v7  ;;  %v1447_v7 = vpack.c.bf16 %v1438_v26, %v1437_v46 }
 0x1e6   : > { %v1380_v14 = vadd.f32 %v3535_v62, %v1359_v6 }
 0x1e8   : > { %v1398_v43 = vmax.f32 %v1380_v14, 0.0  ;;  %v1055_v60 = vpop.f32.mrf.mxu2 }
 0x1e9   : > { %v1186_v24 = vpop.f32.mrf.mxu3  ;;  %v1315_v29 = vpop.f32.mrf.mxu0  ;;  %v1078_v34 = vadd.f32 %v1055_v60, %v3481_v5 }
 0x1ea   : > { %1416 = vst [vmem:[%s3549_s20 + $0x68] sm:$0xff] %v1398_v43  ;;  %v1339_v59 = vadd.f32 %v1315_v29, %v1208_v63  ;;  %v1791_v29 = vld [vmem:[%s3109_s23 + $0x122] sm:$0xff] }
 0x1eb   : > { %v3696_v31 = vpop.f32.mrf.mxu1  ;;  %v1209_v28 = vadd.f32 %v1186_v24, %v1078_v34  ;;  %v1922_v34 = vld [vmem:[%s3109_s23 + $0x12b] sm:$0xff] }
 0x1ec   : > { %v1360_v11 = vmul.f32 %v3530_v0, %v1339_v59  ;;  %2835 = vmatmul.msk.bf16.gmra.mxu0 %vm256_vm1, %v1670_v13  ;;  %v1921_v59 = vld [vmem:[%s3109_s23 + $0x123] sm:$0xff] }
 0x1ed   : > { %2816 = vmatmul.msk.bf16.gmra.mxu2 %vm256_vm1, %v1446_v32  ;;  %v1792_v32 = vld [vmem:[%s3109_s23 + $0x12a] sm:$0xff] }
 0x1ee   : > { %2845 = vmatmul.msk.bf16.gmra.mxu1 %vm256_vm1, %v1929_v27  ;;  %v1381_v35 = vadd.f32 %v3535_v62, %v1360_v11  ;;  %2826 = vmatmul.msk.bf16.gmra.mxu3 %vm256_vm1, %v1670_v13  ;;  %v2165_v11 = vld [vmem:[%s3109_s23 + $0xb4] sm:$0xff] }
 0x1f0   : > { %v1399_v5 = vmax.f32 %v1381_v35, 0.0  ;;  %v1058_v20 = vpop.f32.mrf.mxu2  ;;  %v2166_v35 = vld [vmem:[%s3109_s23 + $0xbc] sm:$0xff] }
 0x1f1   : > { %v1189_v17 = vpop.f32.mrf.mxu3  ;;  %v1317_v21 = vpop.f32.mrf.mxu0  ;;  %v1079_v51 = vadd.f32 %v1058_v20, %v3501_v22 }
 0x1f2   : > { %1417 = vst [vmem:[%s3549_s20 + $0x70] sm:$0xff] %v1399_v5  ;;  %v1340_v57 = vadd.f32 %v1317_v21, %v1209_v28  ;;  %v1801_v5 = vpack.c.bf16 %v1792_v32, %v1791_v29 }
 0x1f3   : > { %v3706_v44 = vpop.f32.mrf.mxu1  ;;  %v1210_v53 = vadd.f32 %v1189_v17, %v1079_v51 }
 0x1f4   : > { %v1361_v42 = vmul.f32 %v3530_v0, %v1340_v57  ;;  %v1931_v57 = vpack.c.bf16 %v1922_v34, %v1921_v59  ;;  %v2298_v59 = vld [vmem:[%s3109_s23 + $0xcd] sm:$0xff] }
 0x1f5   : > { %v2427_v34 = vld [vmem:[%s3109_s23 + $0xc6] sm:$0xff] }
 0x1f6   : > { %v1382_v50 = vadd.f32 %v3535_v62, %v1361_v42 }
 0x1f8   : > { %v1400_v41 = vmax.f32 %v1382_v50, 0.0  ;;  %v1060_v36 = vpop.f32.mrf.mxu2 }
 0x1f9   : > { %v1191_v2 = vpop.f32.mrf.mxu3  ;;  %v1320_v3 = vpop.f32.mrf.mxu0  ;;  %v1080_v9 = vadd.f32 %v1060_v36, %v3518_v47  ;;  %v2296_v36 = vld [vmem:[%s3109_s23 + $0xbd] sm:$0xff] }
 0x1fa   : > { %1418 = vst [vmem:[%s3549_s20 + $0x78] sm:$0xff] %v1400_v41  ;;  %v1341_v22 = vadd.f32 %v1320_v3, %v1210_v53  ;;  %v2295_v41 = vld [vmem:[%s3109_s23 + $0xb5] sm:$0xff]  ;;  %v2167_v3 = vld [vmem:[%s3109_s23 + $0xc4] sm:$0xff] }
 0x1fb   : > { %v3718_v6 = vpop.f32.mrf.mxu1  ;;  %v1211_v14 = vadd.f32 %v1191_v2, %v1080_v9  ;;  %v2426_v2 = vld [vmem:[%s3109_s23 + $0xbe] sm:$0xff] }
 0x1fc   : > { %v1362_v10 = vmul.f32 %v3530_v0, %v1341_v22  ;;  %2836 = vmatmul.msk.bf16.gmra.mxu0 %vm256_vm1, %v1671_v48 }
 0x1fd   : > { %2817 = vmatmul.msk.bf16.gmra.mxu2 %vm256_vm1, %v1447_v7  ;;  %v2168_v7 = vld [vmem:[%s3109_s23 + $0xcc] sm:$0xff] }
 0x1fe   : > { %2846 = vmatmul.msk.bf16.gmra.mxu1 %vm256_vm1, %v1930_v54  ;;  %v1383_v12 = vadd.f32 %v3535_v62, %v1362_v10  ;;  %2827 = vmatmul.msk.bf16.gmra.mxu3 %vm256_vm1, %v1671_v48  ;;  %v2425_v48 = vld [vmem:[%s3109_s23 + $0xb6] sm:$0xff] }
 0x200   : > { %v1401_v56 = vmax.f32 %v1383_v12, 0.0  ;;  %v1600_v47 = vpop.f32.mrf.mxu2 }
 0x201   : > { %v1601_v16 = vadd.f32 %v1600_v47, %v3537_v52  ;;  %v1712_v15 = vpop.f32.mrf.mxu3  ;;  %v1322_v63 = vpop.f32.mrf.mxu0 }
 0x202   : > { %1419 = vst [vmem:[%s3549_s20 + $0x80] sm:$0xff] %v1401_v56  ;;  %v1342_v43 = vadd.f32 %v1322_v63, %v1211_v14  ;;  %v2184_v56 = vpack.c.bf16 %v2168_v7, %v2167_v3  ;;  %v2171_v3 = vld [vmem:[%s3109_s23 + $0xe4] sm:$0xff]  ;;  %v2172_v7 = vld [vmem:[%s3109_s23 + $0xec] sm:$0xff] }
 0x203   : > { %v3729_v60 = vpop.f32.mrf.mxu1  ;;  %v1757_v13 = vadd.f32 %v1712_v15, %v1601_v16 }
 0x204   : > { %v1363_v24 = vmul.f32 %v3530_v0, %v1342_v43  ;;  %v2183_v0 = vpack.c.bf16 %v2166_v35, %v2165_v11  ;;  %v2428_v11 = vld [vmem:[%s3109_s23 + $0xce] sm:$0xff] }
 0x205   : > { %v2169_v35 = vld [vmem:[%s3109_s23 + $0xd4] sm:$0xff] }
 0x206   : > { %v1384_v27 = vadd.f32 %v3535_v62, %v1363_v24 }
 0x208   : > { %v1402_v28 = vmax.f32 %v1384_v27, 0.0  ;;  %v1602_v52 = vpop.f32.mrf.mxu2  ;;  %v2297_v27 = vld [vmem:[%s3109_s23 + $0xc5] sm:$0xff] }
 0x209   : > { %v1603_v20 = vadd.f32 %v1602_v52, %v3552_v18  ;;  %v1714_v17 = vpop.f32.mrf.mxu3  ;;  %v1842_v21 = vpop.f32.mrf.mxu0 }
 0x20a   : > { %1420 = vst [vmem:[%s3549_s20 + $0x88] sm:$0xff] %v1402_v28  ;;  %v1887_v51 = vadd.f32 %v1842_v21, %v1757_v13  ;;  %v2170_v28 = vld [vmem:[%s3109_s23 + $0xdc] sm:$0xff] }
 0x20b   : > { %v1972_v42 = vpop.f32.mrf.mxu1  ;;  %v1758_v46 = vadd.f32 %v1714_v17, %v1603_v20 }
 0x20c   : > { %v3741_v62 = vadd.f32 %v1972_v42, %v1887_v51  ;;  %2837 = vmatmul.msk.bf16.gmra.mxu0 %vm256_vm1, %v1801_v5  ;;  %v2314_v5 = vpack.c.bf16 %v2298_v59, %v2297_v27  ;;  %v2185_v42 = vpack.c.bf16 %v2170_v28, %v2169_v35  ;;  %v2301_v27 = vld [vmem:[%s3109_s23 + $0xe5] sm:$0xff]  ;;  %v2302_v59 = vld [vmem:[%s3109_s23 + $0xed] sm:$0xff]  ;;  %v2174_v28 = vld [vmem:[%s3109_s23 + $0xfc] sm:$0xff] }
 0x20d   : > { %2849 = vmatmul.msk.bf16.vlgmr.msra.gmra.mxu2 %vm256_vm1, %v3492_v19  ;;  %v2313_v19 = vpack.c.bf16 %v2296_v36, %v2295_v41  ;;  %v2299_v41 = vld [vmem:[%s3109_s23 + $0xd5] sm:$0xff]  ;;  %v2300_v36 = vld [vmem:[%s3109_s23 + $0xdd] sm:$0xff] }
 0x20e   : > { %2847 = vmatmul.msk.bf16.gmra.mxu1 %vm256_vm1, %v1931_v57  ;;  %2859 = vmatmul.msk.bf16.vlgmr.msra.gmra.mxu3 %vm256_vm1, %v2183_v0  ;;  %v2173_v35 = vld [vmem:[%s3109_s23 + $0xf4] sm:$0xff] }
 0x210   : > { %v1605_v18 = vpop.f32.mrf.mxu2 }
 0x211   : > { %v1606_v58 = vadd.f32 %v1605_v18, %v3564_v45  ;;  %v1717_v37 = vpop.f32.mrf.mxu3  ;;  %v1844_v50 = vpop.f32.mrf.mxu0  ;;  %v2443_v45 = vpack.c.bf16 %v2426_v2, %v2425_v48  ;;  %v2429_v48 = vld [vmem:[%s3109_s23 + $0xd6] sm:$0xff]  ;;  %v2430_v2 = vld [vmem:[%s3109_s23 + $0xde] sm:$0xff] }
 0x212   : > { %v1888_v26 = vadd.f32 %v1844_v50, %v1758_v46 }
 0x213   : > { %v1974_v55 = vpop.f32.mrf.mxu1  ;;  %v1759_v8 = vadd.f32 %v1717_v37, %v1606_v58 }
 0x214   : > { %v3749_v53 = vadd.f32 %v1974_v55, %v1888_v26 }
 0x218   : > { %v1607_v54 = vpop.f32.mrf.mxu2 }
 0x219   : > { %v1608_v22 = vadd.f32 %v1607_v54, %v3574_v61  ;;  %v1719_v9 = vpop.f32.mrf.mxu3  ;;  %v1847_v10 = vpop.f32.mrf.mxu0 }
 0x21a   : > { %v1889_v12 = vadd.f32 %v1847_v10, %v1759_v8 }
 0x21b   : > { %v1977_v14 = vpop.f32.mrf.mxu1  ;;  %v1760_v47 = vadd.f32 %v1719_v9, %v1608_v22 }
 0x21c   : > { %v3758_v16 = vadd.f32 %v1977_v14, %v1889_v12  ;;  %2869 = vmatmul.msk.bf16.vlgmr.msra.gmra.mxu0 %vm256_vm1, %v2313_v19  ;;  %v2315_v19 = vpack.c.bf16 %v2300_v36, %v2299_v41  ;;  %v2186_v14 = vpack.c.bf16 %v2172_v7, %v2171_v3  ;;  %v2303_v41 = vld [vmem:[%s3109_s23 + $0xf5] sm:$0xff]  ;;  %v2304_v36 = vld [vmem:[%s3109_s23 + $0xfd] sm:$0xff]  ;;  %v2176_v7 = vld [vmem:[%s3109_s23 + $0x10c] sm:$0xff] }
 0x21d   : > { %2850 = vmatmul.msk.bf16.gmra.mxu2 %vm256_vm1, %v2183_v0  ;;  %v2175_v3 = vld [vmem:[%s3109_s23 + $0x104] sm:$0xff] }
 0x21e   : > { %2879 = vmatmul.msk.bf16.vlgmr.msra.gmra.mxu1 %vm256_vm1, %v2443_v45  ;;  %2860 = vmatmul.msk.bf16.gmra.mxu3 %vm256_vm1, %v2184_v56 }
 0x220   : > { %v1610_v61 = vpop.f32.mrf.mxu2 }
 0x221   : > { %v1611_v15 = vadd.f32 %v1610_v61, %v3586_v23  ;;  %v1722_v63 = vpop.f32.mrf.mxu3  ;;  %v1849_v43 = vpop.f32.mrf.mxu0  ;;  %v2444_v23 = vpack.c.bf16 %v2428_v11, %v2427_v34  ;;  %v2431_v34 = vld [vmem:[%s3109_s23 + $0xe6] sm:$0xff]  ;;  %v2432_v11 = vld [vmem:[%s3109_s23 + $0xee] sm:$0xff] }
 0x222   : > { %v1890_v13 = vadd.f32 %v1849_v43, %v1760_v47 }
 0x223   : > { %v1979_v24 = vpop.f32.mrf.mxu1  ;;  %v1761_v29 = vadd.f32 %v1722_v63, %v1611_v15 }
 0x224   : > { %v3765_v32 = vadd.f32 %v1979_v24, %v1890_v13 }
 0x228   : > { %v1612_v52 = vpop.f32.mrf.mxu2 }
 0x229   : > { %v1613_v20 = vadd.f32 %v1612_v52, %v3596_v38  ;;  %v1724_v17 = vpop.f32.mrf.mxu3  ;;  %v1852_v21 = vpop.f32.mrf.mxu0 }
 0x22a   : > { %v1891_v57 = vadd.f32 %v1852_v21, %v1761_v29 }
 0x22b   : > { %v1982_v51 = vpop.f32.mrf.mxu1  ;;  %v1762_v0 = vadd.f32 %v1724_v17, %v1613_v20 }
 0x22c   : > { %v3774_v46 = vadd.f32 %v1982_v51, %v1891_v57  ;;  %2870 = vmatmul.msk.bf16.gmra.mxu0 %vm256_vm1, %v2314_v5  ;;  %v2316_v5 = vpack.c.bf16 %v2302_v59, %v2301_v27  ;;  %v2187_v51 = vpack.c.bf16 %v2174_v28, %v2173_v35  ;;  %v2305_v27 = vld [vmem:[%s3109_s23 + $0x105] sm:$0xff]  ;;  %v2306_v59 = vld [vmem:[%s3109_s23 + $0x10d] sm:$0xff]  ;;  %v2178_v28 = vld [vmem:[%s3109_s23 + $0x11c] sm:$0xff] }
 0x22d   : > { %2851 = vmatmul.msk.bf16.gmra.mxu2 %vm256_vm1, %v2184_v56  ;;  %v2177_v35 = vld [vmem:[%s3109_s23 + $0x114] sm:$0xff] }
 0x22e   : > { %2880 = vmatmul.msk.bf16.gmra.mxu1 %vm256_vm1, %v2444_v23  ;;  %2861 = vmatmul.msk.bf16.gmra.mxu3 %vm256_vm1, %v2185_v42 }
 0x230   : > { %v1615_v38 = vpop.f32.mrf.mxu2 }
 0x231   : > { %v1616_v18 = vadd.f32 %v1615_v38, %v3608_v4  ;;  %v1727_v58 = vpop.f32.mrf.mxu3  ;;  %v1854_v37 = vpop.f32.mrf.mxu0  ;;  %v2445_v4 = vpack.c.bf16 %v2430_v2, %v2429_v48  ;;  %v2433_v48 = vld [vmem:[%s3109_s23 + $0xf6] sm:$0xff]  ;;  %v2434_v2 = vld [vmem:[%s3109_s23 + $0xfe] sm:$0xff] }
 0x232   : > { %v1892_v50 = vadd.f32 %v1854_v37, %v1762_v0 }
 0x233   : > { %v1984_v26 = vpop.f32.mrf.mxu1  ;;  %v1763_v55 = vadd.f32 %v1727_v58, %v1616_v18 }
 0x234   : > { %v3781_v8 = vadd.f32 %v1984_v26, %v1892_v50 }
 0x238   : > { %v1617_v54 = vpop.f32.mrf.mxu2 }
 0x239   : > { %v1618_v22 = vadd.f32 %v1617_v54, %v3618_v25  ;;  %v1729_v9 = vpop.f32.mrf.mxu3  ;;  %v1857_v10 = vpop.f32.mrf.mxu0 }
 0x23a   : > { %v1893_v45 = vadd.f32 %v1857_v10, %v1763_v55 }
 0x23b   : > { %v1987_v12 = vpop.f32.mrf.mxu1  ;;  %v1764_v56 = vadd.f32 %v1729_v9, %v1618_v22 }
 0x23c   : > { %v3790_v47 = vadd.f32 %v1987_v12, %v1893_v45  ;;  %2871 = vmatmul.msk.bf16.gmra.mxu0 %vm256_vm1, %v2315_v19  ;;  %v2317_v19 = vpack.c.bf16 %v2304_v36, %v2303_v41  ;;  %v2188_v12 = vpack.c.bf16 %v2176_v7, %v2175_v3  ;;  %v2307_v41 = vld [vmem:[%s3109_s23 + $0x115] sm:$0xff]  ;;  %v2308_v36 = vld [vmem:[%s3109_s23 + $0x11d] sm:$0xff]  ;;  %v2180_v7 = vld [vmem:[%s3109_s23 + $0x12c] sm:$0xff] }
 0x23d   : > { %2852 = vmatmul.msk.bf16.gmra.mxu2 %vm256_vm1, %v2185_v42  ;;  %v2179_v3 = vld [vmem:[%s3109_s23 + $0x124] sm:$0xff] }
 0x23e   : > { %2881 = vmatmul.msk.bf16.gmra.mxu1 %vm256_vm1, %v2445_v4  ;;  %2862 = vmatmul.msk.bf16.gmra.mxu3 %vm256_vm1, %v2186_v14 }
 0x240   : > { %v1620_v25 = vpop.f32.mrf.mxu2 }
 0x241   : > { %v1621_v61 = vadd.f32 %v1620_v25, %v3630_v40  ;;  %v1732_v15 = vpop.f32.mrf.mxu3  ;;  %v1859_v63 = vpop.f32.mrf.mxu0  ;;  %v2446_v40 = vpack.c.bf16 %v2432_v11, %v2431_v34  ;;  %v2435_v34 = vld [vmem:[%s3109_s23 + $0x106] sm:$0xff]  ;;  %v2436_v11 = vld [vmem:[%s3109_s23 + $0x10e] sm:$0xff] }
 0x242   : > { %v1894_v43 = vadd.f32 %v1859_v63, %v1764_v56 }
 0x243   : > { %v1989_v13 = vpop.f32.mrf.mxu1  ;;  %v1765_v24 = vadd.f32 %v1732_v15, %v1621_v61 }
 0x244   : > { %v3797_v29 = vadd.f32 %v1989_v13, %v1894_v43 }
 0x248   : > { %v1622_v52 = vpop.f32.mrf.mxu2 }
 0x249   : > { %v1623_v20 = vadd.f32 %v1622_v52, %v3640_v1  ;;  %v1734_v17 = vpop.f32.mrf.mxu3  ;;  %v1862_v21 = vpop.f32.mrf.mxu0 }
 0x24a   : > { %v1895_v23 = vadd.f32 %v1862_v21, %v1765_v24 }
 0x24b   : > { %v1992_v57 = vpop.f32.mrf.mxu1  ;;  %v1766_v42 = vadd.f32 %v1734_v17, %v1623_v20 }
 0x24c   : > { %v3806_v0 = vadd.f32 %v1992_v57, %v1895_v23  ;;  %2872 = vmatmul.msk.bf16.gmra.mxu0 %vm256_vm1, %v2316_v5  ;;  %v2318_v5 = vpack.c.bf16 %v2306_v59, %v2305_v27  ;;  %v2189_v57 = vpack.c.bf16 %v2178_v28, %v2177_v35  ;;  %v2309_v27 = vld [vmem:[%s3109_s23 + $0x125] sm:$0xff]  ;;  %v2310_v59 = vld [vmem:[%s3109_s23 + $0x12d] sm:$0xff]  ;;  %v2182_v28 = vld [vmem:[%s3109_s23 + $0x13c] sm:$0xff] }
 0x24d   : > { %2853 = vmatmul.msk.bf16.gmra.mxu2 %vm256_vm1, %v2186_v14  ;;  %v2181_v35 = vld [vmem:[%s3109_s23 + $0x134] sm:$0xff] }
 0x24e   : > { %2882 = vmatmul.msk.bf16.gmra.mxu1 %vm256_vm1, %v2446_v40  ;;  %2863 = vmatmul.msk.bf16.gmra.mxu3 %vm256_vm1, %v2187_v51 }
 0x250   : > { %v1625_v1 = vpop.f32.mrf.mxu2 }
 0x251   : > { %v1626_v38 = vadd.f32 %v1625_v1, %v3652_v39  ;;  %v1737_v18 = vpop.f32.mrf.mxu3  ;;  %v1864_v58 = vpop.f32.mrf.mxu0  ;;  %v2447_v39 = vpack.c.bf16 %v2434_v2, %v2433_v48  ;;  %v2437_v48 = vld [vmem:[%s3109_s23 + $0x116] sm:$0xff]  ;;  %v2438_v2 = vld [vmem:[%s3109_s23 + $0x11e] sm:$0xff] }
 0x252   : > { %v1896_v37 = vadd.f32 %v1864_v58, %v1766_v42 }
 0x253   : > { %v1994_v50 = vpop.f32.mrf.mxu1  ;;  %v1767_v26 = vadd.f32 %v1737_v18, %v1626_v38 }
 0x254   : > { %v3813_v55 = vadd.f32 %v1994_v50, %v1896_v37 }
 0x258   : > { %v1627_v54 = vpop.f32.mrf.mxu2 }
 0x259   : > { %v1628_v22 = vadd.f32 %v1627_v54, %v3662_v30  ;;  %v1739_v9 = vpop.f32.mrf.mxu3  ;;  %v1867_v10 = vpop.f32.mrf.mxu0 }
 0x25a   : > { %v1897_v4 = vadd.f32 %v1867_v10, %v1767_v26 }
 0x25b   : > { %v1997_v45 = vpop.f32.mrf.mxu1  ;;  %v1768_v14 = vadd.f32 %v1739_v9, %v1628_v22 }
 0x25c   : > { %v3822_v56 = vadd.f32 %v1997_v45, %v1897_v4  ;;  %2873 = vmatmul.msk.bf16.gmra.mxu0 %vm256_vm1, %v2317_v19  ;;  %v2319_v19 = vpack.c.bf16 %v2308_v36, %v2307_v41  ;;  %v2190_v45 = vpack.c.bf16 %v2180_v7, %v2179_v3  ;;  %v2312_v41 = vld [vmem:[%s3109_s23 + $0x13d] sm:$0xff] }
 0x25d   : > { %2854 = vmatmul.msk.bf16.gmra.mxu2 %vm256_vm1, %v2187_v51  ;;  %v2441_v36 = vld [vmem:[%s3109_s23 + $0x136] sm:$0xff] }
 0x25e   : > { %2883 = vmatmul.msk.bf16.gmra.mxu1 %vm256_vm1, %v2447_v39  ;;  %2864 = vmatmul.msk.bf16.gmra.mxu3 %vm256_vm1, %v2188_v12 }
 0x260   : > { %v1630_v30 = vpop.f32.mrf.mxu2 }
 0x261   : > { %v1631_v25 = vadd.f32 %v1630_v30, %v3674_v49  ;;  %v1742_v61 = vpop.f32.mrf.mxu3  ;;  %v1869_v15 = vpop.f32.mrf.mxu0  ;;  %v2448_v49 = vpack.c.bf16 %v2436_v11, %v2435_v34  ;;  %v2439_v34 = vld [vmem:[%s3109_s23 + $0x126] sm:$0xff]  ;;  %v2440_v11 = vld [vmem:[%s3109_s23 + $0x12e] sm:$0xff] }
 0x262   : > { %v1898_v63 = vadd.f32 %v1869_v15, %v1768_v14 }
 0x263   : > { %v1999_v43 = vpop.f32.mrf.mxu1  ;;  %v1769_v13 = vadd.f32 %v1742_v61, %v1631_v25 }
 0x264   : > { %v3829_v24 = vadd.f32 %v1999_v43, %v1898_v63 }
 0x268   : > { %v1632_v52 = vpop.f32.mrf.mxu2 }
 0x269   : > { %v1633_v20 = vadd.f32 %v1632_v52, %v3684_v33  ;;  %v1744_v17 = vpop.f32.mrf.mxu3  ;;  %v1872_v21 = vpop.f32.mrf.mxu0 }
 0x26a   : > { %v1899_v40 = vadd.f32 %v1872_v21, %v1769_v13 }
 0x26b   : > { %v2002_v23 = vpop.f32.mrf.mxu1  ;;  %v1770_v51 = vadd.f32 %v1744_v17, %v1633_v20 }
 0x26c   : > { %v3838_v42 = vadd.f32 %v2002_v23, %v1899_v40  ;;  %2874 = vmatmul.msk.bf16.gmra.mxu0 %vm256_vm1, %v2318_v5  ;;  %v2320_v5 = vpack.c.bf16 %v2310_v59, %v2309_v27  ;;  %v2191_v23 = vpack.c.bf16 %v2182_v28, %v2181_v35 }
 0x26d   : > { %2855 = vmatmul.msk.bf16.gmra.mxu2 %vm256_vm1, %v2188_v12 }
 0x26e   : > { %2884 = vmatmul.msk.bf16.gmra.mxu1 %vm256_vm1, %v2448_v49  ;;  %2865 = vmatmul.msk.bf16.gmra.mxu3 %vm256_vm1, %v2189_v57 }
 0x270   : > { %v1635_v33 = vpop.f32.mrf.mxu2 }
 0x271   : > { %v1636_v1 = vadd.f32 %v1635_v33, %v3696_v31  ;;  %v1747_v38 = vpop.f32.mrf.mxu3  ;;  %v1874_v18 = vpop.f32.mrf.mxu0  ;;  %v2449_v31 = vpack.c.bf16 %v2438_v2, %v2437_v48  ;;  %v2442_v48 = vld [vmem:[%s3109_s23 + $0x13e] sm:$0xff] }
 0x272   : > { %v1900_v58 = vadd.f32 %v1874_v18, %v1770_v51 }
 0x273   : > { %v2004_v37 = vpop.f32.mrf.mxu1  ;;  %v1771_v50 = vadd.f32 %v1747_v38, %v1636_v1 }
 0x274   : > { %v3845_v26 = vadd.f32 %v2004_v37, %v1900_v58 }
 0x278   : > { %v1637_v54 = vpop.f32.mrf.mxu2 }
 0x279   : > { %v1638_v22 = vadd.f32 %v1637_v54, %v3706_v44  ;;  %v1749_v9 = vpop.f32.mrf.mxu3  ;;  %v1877_v10 = vpop.f32.mrf.mxu0 }
 0x27a   : > { %v1901_v39 = vadd.f32 %v1877_v10, %v1771_v50  ;;  %v2311_v50 = vld [vmem:[%s3109_s23 + $0x135] sm:$0xff] }
 0x27b   : > { %v2007_v4 = vpop.f32.mrf.mxu1  ;;  %v1772_v12 = vadd.f32 %v1749_v9, %v1638_v22  ;;  %v2321_v7 = vpack.c.bf16 %v2312_v41, %v2311_v50  ;;  %v2451_v22 = vpack.c.bf16 %v2442_v48, %v2441_v36 }
 0x27c   : > { %v3854_v14 = vadd.f32 %v2007_v4, %v1901_v39  ;;  %2875 = vmatmul.msk.bf16.gmra.mxu0 %vm256_vm1, %v2319_v19 }
 0x27d   : > { %2856 = vmatmul.msk.bf16.gmra.mxu2 %vm256_vm1, %v2189_v57 }
 0x27e   : > { %2885 = vmatmul.msk.bf16.gmra.mxu1 %vm256_vm1, %v2449_v31  ;;  %2866 = vmatmul.msk.bf16.gmra.mxu3 %vm256_vm1, %v2190_v45 }
 0x280   : > { %v1640_v44 = vpop.f32.mrf.mxu2 }
 0x281   : > { %v1641_v30 = vadd.f32 %v1640_v44, %v3718_v6  ;;  %v1752_v25 = vpop.f32.mrf.mxu3  ;;  %v1879_v61 = vpop.f32.mrf.mxu0  ;;  %v2450_v6 = vpack.c.bf16 %v2440_v11, %v2439_v34 }
 0x282   : > { %v1902_v15 = vadd.f32 %v1879_v61, %v1772_v12  ;;  %v3895_v12 = vld [vmem:[%s4003_s3] ss:$0 sm:$0xff] }
 0x283   : > { %v2009_v63 = vpop.f32.mrf.mxu1  ;;  %v1773_v43 = vadd.f32 %v1752_v25, %v1641_v30 }
 0x284   : > { %v3861_v13 = vadd.f32 %v2009_v63, %v1902_v15 }
 0x288   : > { %v1642_v52 = vpop.f32.mrf.mxu2 }
 0x289   : > { %v1643_v20 = vadd.f32 %v1642_v52, %v3729_v60  ;;  %v1754_v17 = vpop.f32.mrf.mxu3  ;;  %v1882_v21 = vpop.f32.mrf.mxu0 }
 0x28a   : > { %v1903_v49 = vadd.f32 %v1882_v21, %v1773_v43 }
 0x28b   : > { %v2012_v40 = vpop.f32.mrf.mxu1  ;;  %v1774_v57 = vadd.f32 %v1754_v17, %v1643_v20 }
 0x28c   : > { %v3870_v51 = vadd.f32 %v2012_v40, %v1903_v49  ;;  %2876 = vmatmul.msk.bf16.gmra.mxu0 %vm256_vm1, %v2320_v5 }
 0x28d   : > { %2857 = vmatmul.msk.bf16.gmra.mxu2 %vm256_vm1, %v2190_v45 }
 0x28e   : > { %2886 = vmatmul.msk.bf16.gmra.mxu1 %vm256_vm1, %v2450_v6  ;;  %2867 = vmatmul.msk.bf16.gmra.mxu3 %vm256_vm1, %v2191_v23 }
 0x290   : > { %v2102_v60 = vpop.f32.mrf.mxu2 }
 0x291   : > { %v2232_v33 = vpop.f32.mrf.mxu3  ;;  %v1884_v1 = vpop.f32.mrf.mxu0  ;;  %v2147_v58 = vadd.f32 %v2102_v60, %v3741_v62  ;;  %v3889_v62 = vld [vmem:[%s4002_s2] ss:$0 sm:$0xff] }
 0x292   : > { %v1904_v38 = vadd.f32 %v1884_v1, %v1774_v57 }
 0x293   : > { %v2014_v18 = vpop.f32.mrf.mxu1  ;;  %v2277_v2 = vadd.f32 %v2232_v33, %v2147_v58 }
 0x294   : > { %v3877_v37 = vadd.f32 %v2014_v18, %v1904_v38 }
 0x298   : > { %v2104_v3 = vpop.f32.mrf.mxu2 }
 0x299   : > { %v2234_v54 = vpop.f32.mrf.mxu3  ;;  %v2362_v19 = vpop.f32.mrf.mxu0  ;;  %v2148_v31 = vadd.f32 %v2104_v3, %v3749_v53 }
 0x29a   : > { %v2407_v9 = vadd.f32 %v2362_v19, %v2277_v2 }
 0x29b   : > { %v2492_v10 = vpop.f32.mrf.mxu1  ;;  %v2278_v45 = vadd.f32 %v2234_v54, %v2148_v31 }
 0x29c   : > { %v2537_v39 = vadd.f32 %v2492_v10, %v2407_v9  ;;  %2877 = vmatmul.msk.bf16.gmra.mxu0 %vm256_vm1, %v2321_v7 }
 0x29e   : > { %2887 = vmatmul.msk.bf16.gmra.mxu1 %vm256_vm1, %v2451_v22  ;;  %v2555_v4 = vmul.f32 %v3889_v62, %v2537_v39 }
 0x2a0   : > { %v2573_v53 = vadd.f32 %v3895_v12, %v2555_v4  ;;  %v2107_v44 = vpop.f32.mrf.mxu2 }
 0x2a1   : > { %v2237_v30 = vpop.f32.mrf.mxu3  ;;  %v2364_v25 = vpop.f32.mrf.mxu0  ;;  %v2149_v43 = vadd.f32 %v2107_v44, %v3758_v16 }
 0x2a2   : > { %v2591_v61 = vmax.f32 %v2573_v53, 0.0  ;;  %v2408_v15 = vadd.f32 %v2364_v25, %v2278_v45 }
 0x2a3   : > { %v2494_v63 = vpop.f32.mrf.mxu1  ;;  %v2279_v34 = vadd.f32 %v2237_v30, %v2149_v43 }
 0x2a4   : > { %2609 = vst [vmem:[%s3549_s20 + $0x90] sm:$0xff] %v2591_v61  ;;  %v2538_v27 = vadd.f32 %v2494_v63, %v2408_v15 }
 0x2a6   : > { %v2556_v59 = vmul.f32 %v3889_v62, %v2538_v27 }
 0x2a8   : > { %v2574_v11 = vadd.f32 %v3895_v12, %v2556_v59  ;;  %v2109_v35 = vpop.f32.mrf.mxu2 }
 0x2a9   : > { %v2239_v28 = vpop.f32.mrf.mxu3  ;;  %v2367_v52 = vpop.f32.mrf.mxu0  ;;  %v2150_v21 = vadd.f32 %v2109_v35, %v3765_v32 }
 0x2aa   : > { %v2592_v5 = vmax.f32 %v2574_v11, 0.0  ;;  %v2409_v20 = vadd.f32 %v2367_v52, %v2279_v34 }
 0x2ab   : > { %v2497_v17 = vpop.f32.mrf.mxu1  ;;  %v2280_v16 = vadd.f32 %v2239_v28, %v2150_v21 }
 0x2ac   : > { %2610 = vst [vmem:[%s3549_s20 + $0x98] sm:$0xff] %v2592_v5  ;;  %v2539_v6 = vadd.f32 %v2497_v17, %v2409_v20 }
 0x2ae   : > { %v2557_v49 = vmul.f32 %v3889_v62, %v2539_v6 }
 0x2b0   : > { %v2575_v40 = vadd.f32 %v3895_v12, %v2557_v49  ;;  %v2112_v23 = vpop.f32.mrf.mxu2 }
 0x2b1   : > { %v2242_v57 = vpop.f32.mrf.mxu3  ;;  %v2369_v60 = vpop.f32.mrf.mxu0  ;;  %v2151_v18 = vadd.f32 %v2112_v23, %v3774_v46 }
 0x2b2   : > { %v2593_v33 = vmax.f32 %v2575_v40, 0.0  ;;  %v2410_v1 = vadd.f32 %v2369_v60, %v2280_v16 }
 0x2b3   : > { %v2499_v38 = vpop.f32.mrf.mxu1  ;;  %v2281_v32 = vadd.f32 %v2242_v57, %v2151_v18 }
 0x2b4   : > { %2611 = vst [vmem:[%s3549_s20 + $0xa0] sm:$0xff] %v2593_v33  ;;  %v2540_v58 = vadd.f32 %v2499_v38, %v2410_v1 }
 0x2b6   : > { %v2558_v50 = vmul.f32 %v3889_v62, %v2540_v58 }
 0x2b8   : > { %v2576_v41 = vadd.f32 %v3895_v12, %v2558_v50  ;;  %v2114_v36 = vpop.f32.mrf.mxu2 }
 0x2b9   : > { %v2244_v48 = vpop.f32.mrf.mxu3  ;;  %v2372_v2 = vpop.f32.mrf.mxu0  ;;  %v2152_v19 = vadd.f32 %v2114_v36, %v3781_v8 }
 0x2ba   : > { %v2594_v3 = vmax.f32 %v2576_v41, 0.0  ;;  %v2411_v7 = vadd.f32 %v2372_v2, %v2281_v32 }
 0x2bb   : > { %v2502_v54 = vpop.f32.mrf.mxu1  ;;  %v2282_v46 = vadd.f32 %v2244_v48, %v2152_v19 }
 0x2bc   : > { %2612 = vst [vmem:[%s3549_s20 + $0xa8] sm:$0xff] %v2594_v3  ;;  %v2541_v22 = vadd.f32 %v2502_v54, %v2411_v7 }
 0x2be   : > { %v2559_v9 = vmul.f32 %v3889_v62, %v2541_v22 }
 0x2c0   : > { %v2577_v10 = vadd.f32 %v3895_v12, %v2559_v9  ;;  %v2117_v31 = vpop.f32.mrf.mxu2 }
 0x2c1   : > { %v2247_v39 = vpop.f32.mrf.mxu3  ;;  %v2374_v4 = vpop.f32.mrf.mxu0  ;;  %v2153_v30 = vadd.f32 %v2117_v31, %v3790_v47 }
 0x2c2   : > { %v2595_v45 = vmax.f32 %v2577_v10, 0.0  ;;  %v2412_v53 = vadd.f32 %v2374_v4, %v2282_v46 }
 0x2c3   : > { %v2504_v44 = vpop.f32.mrf.mxu1  ;;  %v2283_v8 = vadd.f32 %v2247_v39, %v2153_v30 }
 0x2c4   : > { %2613 = vst [vmem:[%s3549_s20 + $0xb0] sm:$0xff] %v2595_v45  ;;  %v2542_v25 = vadd.f32 %v2504_v44, %v2412_v53 }
 0x2c6   : > { %v2560_v61 = vmul.f32 %v3889_v62, %v2542_v25 }
 0x2c8   : > { %v2578_v15 = vadd.f32 %v3895_v12, %v2560_v61  ;;  %v2119_v63 = vpop.f32.mrf.mxu2 }
 0x2c9   : > { %v2249_v43 = vpop.f32.mrf.mxu3  ;;  %v2377_v27 = vpop.f32.mrf.mxu0  ;;  %v2154_v35 = vadd.f32 %v2119_v63, %v3797_v29 }
 0x2ca   : > { %v2596_v59 = vmax.f32 %v2578_v15, 0.0  ;;  %v2413_v34 = vadd.f32 %v2377_v27, %v2283_v8 }
 0x2cb   : > { %v2507_v11 = vpop.f32.mrf.mxu1  ;;  %v2284_v47 = vadd.f32 %v2249_v43, %v2154_v35 }
 0x2cc   : > { %2614 = vst [vmem:[%s3549_s20 + $0xb8] sm:$0xff] %v2596_v59  ;;  %v2543_v28 = vadd.f32 %v2507_v11, %v2413_v34 }
 0x2ce   : > { %v2561_v52 = vmul.f32 %v3889_v62, %v2543_v28 }
 0x2d0   : > { %v2579_v5 = vadd.f32 %v3895_v12, %v2561_v52  ;;  %v2122_v20 = vpop.f32.mrf.mxu2 }
 0x2d1   : > { %v2252_v17 = vpop.f32.mrf.mxu3  ;;  %v2379_v21 = vpop.f32.mrf.mxu0  ;;  %v2155_v40 = vadd.f32 %v2122_v20, %v3806_v0 }
 0x2d2   : > { %v2597_v6 = vmax.f32 %v2579_v5, 0.0  ;;  %v2414_v49 = vadd.f32 %v2379_v21, %v2284_v47 }
 0x2d3   : > { %v2509_v16 = vpop.f32.mrf.mxu1  ;;  %v2285_v29 = vadd.f32 %v2252_v17, %v2155_v40 }
 0x2d4   : > { %2615 = vst [vmem:[%s3549_s20 + $0xc0] sm:$0xff] %v2597_v6  ;;  %v2544_v23 = vadd.f32 %v2509_v16, %v2414_v49 }
 0x2d6   : > { %v2562_v57 = vmul.f32 %v3889_v62, %v2544_v23 }
 0x2d8   : > { %v2580_v60 = vadd.f32 %v3895_v12, %v2562_v57  ;;  %v2124_v33 = vpop.f32.mrf.mxu2 }
 0x2d9   : > { %v2254_v1 = vpop.f32.mrf.mxu3  ;;  %v2382_v38 = vpop.f32.mrf.mxu0  ;;  %v2156_v32 = vadd.f32 %v2124_v33, %v3813_v55 }
 0x2da   : > { %v2598_v18 = vmax.f32 %v2580_v60, 0.0  ;;  %v2415_v58 = vadd.f32 %v2382_v38, %v2285_v29 }
 0x2db   : > { %v2512_v50 = vpop.f32.mrf.mxu1  ;;  %v2286_v0 = vadd.f32 %v2254_v1, %v2156_v32 }
 0x2dc   : > { %2616 = vst [vmem:[%s3549_s20 + $0xc8] sm:$0xff] %v2598_v18  ;;  %v2545_v41 = vadd.f32 %v2512_v50, %v2415_v58 }
 0x2de   : > { %v2563_v36 = vmul.f32 %v3889_v62, %v2545_v41 }
 0x2e0   : > { %v2581_v48 = vadd.f32 %v3895_v12, %v2563_v36  ;;  %v2127_v2 = vpop.f32.mrf.mxu2 }
 0x2e1   : > { %v2257_v3 = vpop.f32.mrf.mxu3  ;;  %v2384_v7 = vpop.f32.mrf.mxu0  ;;  %v2157_v9 = vadd.f32 %v2127_v2, %v3822_v56 }
 0x2e2   : > { %v2599_v54 = vmax.f32 %v2581_v48, 0.0  ;;  %v2416_v19 = vadd.f32 %v2384_v7, %v2286_v0 }
 0x2e3   : > { %v2514_v22 = vpop.f32.mrf.mxu1  ;;  %v2287_v55 = vadd.f32 %v2257_v3, %v2157_v9 }
 0x2e4   : > { %2617 = vst [vmem:[%s3549_s20 + $0xd0] sm:$0xff] %v2599_v54  ;;  %v2546_v46 = vadd.f32 %v2514_v22, %v2416_v19 }
 0x2e6   : > { %v2564_v10 = vmul.f32 %v3889_v62, %v2546_v46 }
 0x2e8   : > { %v2582_v31 = vadd.f32 %v3895_v12, %v2564_v10  ;;  %v2129_v39 = vpop.f32.mrf.mxu2 }
 0x2e9   : > { %v2259_v4 = vpop.f32.mrf.mxu3  ;;  %v2387_v45 = vpop.f32.mrf.mxu0  ;;  %v2158_v25 = vadd.f32 %v2129_v39, %v3829_v24 }
 0x2ea   : > { %v2600_v53 = vmax.f32 %v2582_v31, 0.0  ;;  %v2417_v44 = vadd.f32 %v2387_v45, %v2287_v55 }
 0x2eb   : > { %v2517_v30 = vpop.f32.mrf.mxu1  ;;  %v2288_v56 = vadd.f32 %v2259_v4, %v2158_v25 }
 0x2ec   : > { %2618 = vst [vmem:[%s3549_s20 + $0xd8] sm:$0xff] %v2600_v53  ;;  %v2547_v61 = vadd.f32 %v2517_v30, %v2417_v44 }
 0x2ee   : > { %v2565_v8 = vmul.f32 %v3889_v62, %v2547_v61 }
 0x2f0   : > { %v2583_v15 = vadd.f32 %v3895_v12, %v2565_v8  ;;  %v2132_v63 = vpop.f32.mrf.mxu2 }
 0x2f1   : > { %v2262_v43 = vpop.f32.mrf.mxu3  ;;  %v2389_v27 = vpop.f32.mrf.mxu0  ;;  %v2159_v35 = vadd.f32 %v2132_v63, %v3838_v42 }
 0x2f2   : > { %v2601_v59 = vmax.f32 %v2583_v15, 0.0  ;;  %v2418_v34 = vadd.f32 %v2389_v27, %v2288_v56 }
 0x2f3   : > { %v2519_v11 = vpop.f32.mrf.mxu1  ;;  %v2289_v24 = vadd.f32 %v2262_v43, %v2159_v35 }
 0x2f4   : > { %2619 = vst [vmem:[%s3549_s20 + $0xe0] sm:$0xff] %v2601_v59  ;;  %v2548_v28 = vadd.f32 %v2519_v11, %v2418_v34 }
 0x2f6   : > { %v2566_v52 = vmul.f32 %v3889_v62, %v2548_v28 }
 0x2f8   : > { %v2584_v47 = vadd.f32 %v3895_v12, %v2566_v52  ;;  %v2134_v5 = vpop.f32.mrf.mxu2 }
 0x2f9   : > { %v2264_v20 = vpop.f32.mrf.mxu3  ;;  %v2392_v17 = vpop.f32.mrf.mxu0  ;;  %v2160_v16 = vadd.f32 %v2134_v5, %v3845_v26 }
 0x2fa   : > { %v2602_v21 = vmax.f32 %v2584_v47, 0.0  ;;  %v2419_v6 = vadd.f32 %v2392_v17, %v2289_v24 }
 0x2fb   : > { %v2522_v49 = vpop.f32.mrf.mxu1  ;;  %v2290_v42 = vadd.f32 %v2264_v20, %v2160_v16 }
 0x2fc   : > { %2620 = vst [vmem:[%s3549_s20 + $0xe8] sm:$0xff] %v2602_v21  ;;  %v2549_v40 = vadd.f32 %v2522_v49, %v2419_v6 }
 0x2fe   : > { %v2567_v23 = vmul.f32 %v3889_v62, %v2549_v40 }
 0x300   : > { %v2585_v57 = vadd.f32 %v3895_v12, %v2567_v23  ;;  %v2137_v29 = vpop.f32.mrf.mxu2 }
 0x301   : > { %v2267_v60 = vpop.f32.mrf.mxu3  ;;  %v2394_v33 = vpop.f32.mrf.mxu0  ;;  %v2161_v58 = vadd.f32 %v2137_v29, %v3854_v14 }
 0x302   : > { %v2603_v1 = vmax.f32 %v2585_v57, 0.0  ;;  %v2420_v38 = vadd.f32 %v2394_v33, %v2290_v42 }
 0x303   : > { %v2524_v18 = vpop.f32.mrf.mxu1  ;;  %v2291_v26 = vadd.f32 %v2267_v60, %v2161_v58 }
 0x304   : > { %2621 = vst [vmem:[%s3549_s20 + $0xf0] sm:$0xff] %v2603_v1  ;;  %v2550_v50 = vadd.f32 %v2524_v18, %v2420_v38 }
 0x306   : > { %v2568_v32 = vmul.f32 %v3889_v62, %v2550_v50 }
 0x308   : > { %v2586_v41 = vadd.f32 %v3895_v12, %v2568_v32  ;;  %v2139_v36 = vpop.f32.mrf.mxu2 }
 0x309   : > { %v2397_v0 = vpop.f32.mrf.mxu0  ;;  %v2269_v7 = vpop.f32.mrf.mxu3  ;;  %v2162_v54 = vadd.f32 %v2139_v36, %v3861_v13 }
 0x30a   : > { %v2604_v48 = vmax.f32 %v2586_v41, 0.0  ;;  %v2421_v2 = vadd.f32 %v2397_v0, %v2291_v26 }
 0x30b   : > { %v2527_v3 = vpop.f32.mrf.mxu1  ;;  %v2292_v14 = vadd.f32 %v2269_v7, %v2162_v54 }
 0x30c   : > { %2622 = vst [vmem:[%s3549_s20 + $0xf8] sm:$0xff] %v2604_v48  ;;  %v2551_v19 = vadd.f32 %v2527_v3, %v2421_v2 }
 0x30e   : > { %v2569_v22 = vmul.f32 %v3889_v62, %v2551_v19 }
 0x310   : > { %v2587_v9 = vadd.f32 %v3895_v12, %v2569_v22  ;;  %v2142_v46 = vpop.f32.mrf.mxu2 }
 0x311   : > { %v2399_v10 = vpop.f32.mrf.mxu0  ;;  %v2163_v4 = vadd.f32 %v2142_v46, %v3870_v51  ;;  %v2272_v53 = vpop.f32.mrf.mxu3 }
 0x312   : > { %v2605_v55 = vmax.f32 %v2587_v9, 0.0  ;;  %v2422_v31 = vadd.f32 %v2399_v10, %v2292_v14 }
 0x313   : > { %v2529_v39 = vpop.f32.mrf.mxu1  ;;  %v2293_v44 = vadd.f32 %v2272_v53, %v2163_v4 }
 0x314   : > { %2623 = vst [vmem:[%s3549_s20 + $0x100] sm:$0xff] %v2605_v55  ;;  %v2552_v45 = vadd.f32 %v2529_v39, %v2422_v31 }
 0x316   : > { %v2570_v13 = vmul.f32 %v3889_v62, %v2552_v45 }
 0x318   : > { %v2588_v30 = vadd.f32 %v3895_v12, %v2570_v13  ;;  %v2144_v25 = vpop.f32.mrf.mxu2 }
 0x319   : > { %v2402_v61 = vpop.f32.mrf.mxu0  ;;  %v2164_v63 = vadd.f32 %v2144_v25, %v3877_v37  ;;  %v2274_v27 = vpop.f32.mrf.mxu3 }
 0x31a   : > { %v2606_v8 = vmax.f32 %v2588_v30, 0.0  ;;  %v2423_v56 = vadd.f32 %v2402_v61, %v2293_v44 }
 0x31b   : > { %v2532_v15 = vpop.f32.mrf.mxu1  ;;  %v2294_v59 = vadd.f32 %v2274_v27, %v2164_v63 }
 0x31c   : > { %2624 = vst [vmem:[%s3549_s20 + $0x108] sm:$0xff] %v2606_v8  ;;  %v2553_v43 = vadd.f32 %v2532_v15, %v2423_v56 }
 0x31e   : > { %v2571_v51 = vmul.f32 %v3889_v62, %v2553_v43 }
 0x320   : > { %v2589_v34 = vadd.f32 %v3895_v12, %v2571_v51 }
 0x321   : > { %v2404_v11 = vpop.f32.mrf.mxu0 }
 0x322   : > { %v2607_v35 = vmax.f32 %v2589_v34, 0.0  ;;  %v2424_v28 = vadd.f32 %v2404_v11, %v2294_v59 }
 0x323   : > { %v2534_v52 = vpop.f32.mrf.mxu1 }
 0x324   : > { %2625 = vst [vmem:[%s3549_s20 + $0x110] sm:$0xff] %v2607_v35  ;;  %v2554_v37 = vadd.f32 %v2534_v52, %v2424_v28 }
 0x326   : > { %v2572_v24 = vmul.f32 %v3889_v62, %v2554_v37 }
 0x328   : > { %v2590_v47 = vadd.f32 %v3895_v12, %v2572_v24 }
 0x32a   : > { %v2608_v5 = vmax.f32 %v2590_v47, 0.0 }
 0x32c   : > { %2626 = vst [vmem:[%s3549_s20 + $0x118] sm:$0xff] %v2608_v5 }
 0x32d   : > { %2968 = shalt.err (!%p2965_p3)
}
 0x32e   : > { %s3005_s9 = smov 128   ;;  %s3006_s20 = smov 8  }
 0x32f   : > { %2896 = dma.vmem_to_hbm [thread:$0]  (%p3070_p5), %s2641_s7, 4608, %s2643_s19, %s2628_s8, %s3005_s9, %s3005_s9, %s3006_s20  }
 0x330 PF: > { %p2902_p4 = scmp.ge.s32.totalorder %s3003_s18, 2  ;;  %s2657_s23 = sand.u32 1, %s2991_s15  }
 0x331   : > { %s2658_s28 = scalar_lea.sflag [#allocation3], %s2657_s23 }
 0x332   : > { %p2899_p7 = pnand %p2902_p4, %p3074_p6 }
 0x334   : > { %p2900_p8 = pneg %p2899_p7 }
 0x336   : > { %2986 = dma.done.wait (%p2900_p8), %s2658_s28, 4608  }
 0x337   : > { %2988 = vsyncadd (%p2900_p8), %s2658_s28, 4294962688  ;;  %p14_p9 = scmp.ge.s32.totalorder %s3057_s21, 4   ;;  %s4007_s15 = smov %s2995_s16 }
 0x338   : > { %s4008_s16 = smov %s2999_s17  ;;  %s4009_s17 = smov %s3068_s24 }
 0x339   : > { %s4010_s18 = smov %s3057_s21  ;;  %16 = sbr.rel (!%p14_p9) target bundleno = 3 (0x3), region = 79 }
 0x33e   :  { %2664 = vsyncpa [#allocation3], 1 }
 0x33f   :  { %2666 = vsyncpa [#allocation3 + $0x1], 1 }

</bundles_post_ra>
